<compile_context>
chip_gen: v7x
topology: tpu7x:2x2x1
jax: 0.10.0
libtpu: 0.0.40
codegen_flags: <defaults>
</compile_context>

<pallas_src>
import functools
import numpy as np
import jax
import jax.numpy as jnp
from jax import lax
from jax.experimental import pallas as pl
from jax.experimental.pallas import tpu as pltpu

INIT = 0.01


# --------------------------- fused stream kernel -----------------------------

def _make_stream_kernel(n_el, n_up, n_sh, n_ph, n_layers, fs0, tb):
    n_dn = n_el - n_up
    NP = n_el * (n_el - 1)
    f32 = jnp.float32
    # NOTE: fully spin-polarised systems (n_up == 0 or n_dn == 0) are not
    # supported -- the reference torch Mixer divides by the spin count too.
    inv_up = 1.0 / float(max(n_up, 1))
    inv_dn = 1.0 / float(max(n_dn, 1))
    # pairwise row m = e*(n_el-1)+j holds pair (e, nb[e][j]) with nb[e] sorted, so
    # the spin-up neighbours of e are a contiguous prefix of length k_up[e].
    k_up = [n_up - 1 if e < n_up else n_up for e in range(n_el)]

    def _dot(a, b):
        return jnp.dot(a, b, preferred_element_type=f32)

    def _seg_sum(x, c0, c1, scale):
        # sum of lane-blocks [c0, c1) of x (each block is tb lanes), scaled.
        if c1 <= c0:
            return jnp.zeros((x.shape[0], tb), f32)
        acc = x[:, c0 * tb:(c0 + 1) * tb]
        for c in range(c0 + 1, c1):
            acc = acc + x[:, c * tb:(c + 1) * tb]
        return acc * scale

    def spin_sums(s):                          # s: (F, n_el*tb)
        return (_seg_sum(s, 0, n_up, inv_up),
                _seg_sum(s, n_up, n_el, inv_dn))

    def pair_spin_sums(p):                     # p: (F, NP*tb)
        pu, pd = [], []
        for e in range(n_el):
            base = e * (n_el - 1)
            k = k_up[e]
            pu.append(_seg_sum(p, base, base + k, inv_up))
            pd.append(_seg_sum(p, base + k, base + n_el - 1, inv_dn))
        return jnp.concatenate(pu, axis=-1), jnp.concatenate(pd, axis=-1)

    def single_update(s, p, w_split, w_s, fs, fp, residual):
        # ONE dot per weight: electrons stacked along the MXU N (lane) axis.
        # TODO(synk): optionally cast the dot operands to bf16 on v6e/v7x; kept
        # f32 here to preserve the reference numerics exactly.
        su, sd = spin_sums(s)
        pu, pd = pair_spin_sums(p)
        split_pre = _dot(w_split[:, :fs], su) + _dot(w_split[:, fs:], sd)
        common = w_s[:, fs + 2 * fp:fs + 2 * fp + 1] + split_pre     # hoisted
        arg = (_dot(w_s[:, :fs], s)
               + _dot(w_s[:, fs:fs + fp], pu)
               + _dot(w_s[:, fs + fp:fs + 2 * fp], pd)
               + jnp.concatenate([common] * n_el, axis=-1))
        h = jnp.tanh(arg)
        return h + s if residual else h

    def pair_update(p, w_p, fp, residual):
        h = jnp.tanh(_dot(w_p[:, :fp], p) + w_p[:, fp:fp + 1])
        return h + p if residual else h

    def kernel(s0_ref, p0_ref, wsp0_ref, ws0_ref, wp0_ref,
               wspl_ref, wsl_ref, wpl_ref, weu_ref, wed_ref,
               fac_up_ref, fac_dn_ref):
        # ---- input layer ----
        s = single_update(s0_ref[...], p0_ref[...], wsp0_ref[...], ws0_ref[...],
                          fs0, 4, residual=False)                   # (n_sh, n_el*tb)
        p = pair_update(p0_ref[...], wp0_ref[...], 4, residual=False)  # (n_ph, NP*tb)

        # ---- intermediate layers (fori_loop bounds live ranges for big n_layers)
        def layer_body(l, carry):
            s_c, p_c = carry
            s_new = single_update(s_c, p_c, wspl_ref[l], wsl_ref[l],
                                  n_sh, n_ph, residual=True)
            p_new = pair_update(p_c, wpl_ref[l], n_ph, residual=True)
            return s_new, p_new

        s, p = lax.fori_loop(0, n_layers - 1, layer_body, (s, p),
                             unroll=(n_layers <= 4))
        # last layer: its pairwise update is never consumed downstream -> skipped.
        s = single_update(s, p, wspl_ref[n_layers - 1], wsl_ref[n_layers - 1],
                          n_sh, n_ph, residual=True)

        # ---- envelope linear factors (bias column folded in, lane-dense stores)
        weu = weu_ref[...]
        wed = wed_ref[...]
        fac_up_ref[...] = _dot(weu[:, :n_sh], s[:, :n_up * tb]) + weu[:, n_sh:]
        fac_dn_ref[...] = _dot(wed[:, :n_sh], s[:, n_up * tb:]) + wed[:, n_sh:]

    return kernel


# ------------------------- block / VMEM sizing --------------------------------

def _vmem_capacity_bytes():
    try:
        return int(pltpu.get_tpu_info().vmem_capacity_bytes)
    except Exception:
        return 64 << 20                     # conservative default (v7x per-core)


def _per_walker_vmem_bytes(cfg):
    n_el, n_up = cfg['n_el'], cfg['n_up']
    n_dn = n_el - n_up
    n_sh, n_ph, n_det, n_atoms = cfg['n_sh'], cfg['n_ph'], cfg['n_det'], cfg['n_atoms']
    NP = n_el * (n_el - 1)
    fs0 = 4 * n_atoms
    io = n_el * fs0 + 4 * NP + n_det * (n_up * n_up + n_dn * n_dn)
    live = 4 * n_el * n_sh + 3 * NP * n_ph + 4 * n_el * n_ph + 2 * n_sh
    return 4 * (2 * io + live)              # f32; I/O blocks double-buffered


def _pick_block(batch, per_walker_bytes):
    """Walker block (lane) size + padded batch, derived from this chip's VMEM."""
    budget = max(2 << 20, _vmem_capacity_bytes() // 2)   # headroom: weights, pipeline
    cap = max(128, min(512, (budget // max(per_walker_bytes, 1)) // 128 * 128))
    if batch <= 128:
        return batch, batch                 # one full block (block == full dim)
    tb = cap
    while tb > 128 and -(-batch // tb) < 2:  # >=2 grid steps: feed both v7x cores
        tb //= 2
    batch_pad = -(-batch // tb) * tb         # pad the batch, don't shrink the tile
    return tb, batch_pad


# ---------------------------- pallas_call wrapper ------------------------------

def stream_network(single2d, pair2d, weights, cfg, tb, nb):
    n_el, n_up, n_atoms = cfg['n_el'], cfg['n_up'], cfg['n_atoms']
    n_dn = n_el - n_up
    n_sh, n_ph, n_det, n_layers = cfg['n_sh'], cfg['n_ph'], cfg['n_det'], cfg['n_layers']
    assert n_layers >= 1
    fs0 = 4 * n_atoms
    NP = n_el * (n_el - 1)
    kernel = _make_stream_kernel(n_el, n_up, n_sh, n_ph, n_layers, fs0, tb)

    def wspec(shape):
        idx = (lambda b: (0, 0)) if len(shape) == 2 else (lambda b: (0, 0, 0))
        try:   # grid-invariant weights: single buffer (halves weight VMEM)
            return pl.BlockSpec(shape, idx, pipeline_mode=pl.Buffered(1))
        except TypeError:
            return pl.BlockSpec(shape, idx)

    bp = nb * tb
    flops = 2 * bp * (
        n_el * (fs0 + 8) * n_sh + 2 * fs0 * n_sh + NP * 4 * n_ph
        + n_layers * (n_el * (n_sh + 2 * n_ph) * n_sh + 2 * n_sh * n_sh)
        + (n_layers - 1) * NP * n_ph * n_ph
        + n_det * (n_up * n_up + n_dn * n_dn) * n_sh)
    transcend = bp * ((n_layers + 1) * n_el * n_sh + n_layers * NP * n_ph)
    bytes_acc = 4 * (bp * (n_el * fs0 + 4 * NP + n_det * (n_up * n_up + n_dn * n_dn))
                     + sum(int(np.prod(w.shape)) for w in weights))

    out_shape = (jax.ShapeDtypeStruct((n_det * n_up, nb * n_up * tb), jnp.float32),
                 jax.ShapeDtypeStruct((n_det * n_dn, nb * n_dn * tb), jnp.float32))

    return pl.pallas_call(
        kernel,
        out_shape=out_shape,
        grid=(nb,),
        in_specs=[
            pl.BlockSpec((fs0, n_el * tb), lambda b: (0, b)),       # single stream in
            pl.BlockSpec((4, NP * tb), lambda b: (0, b)),           # pairwise stream in
            wspec((n_sh, 2 * fs0)),                                 # lin_split_in^T
            wspec((n_sh, fs0 + 9)),                                 # stream_s0^T
            wspec((n_ph, 5)),                                       # stream_p0^T
            wspec((n_layers, n_sh, 2 * n_sh)),                      # single_splits^T
            wspec((n_layers, n_sh, n_sh + 2 * n_ph + 1)),           # single_intermediate^T
            wspec((n_layers, n_ph, n_ph + 1)),                      # pairwise_intermediate^T
            wspec((n_det * n_up, n_sh + 1)),                        # env_up_linear (flat)
            wspec((n_det * n_dn, n_sh + 1)),                        # env_down_linear (flat)
        ],
        out_specs=(pl.BlockSpec((n_det * n_up, n_up * tb), lambda b: (0, b)),
                   pl.BlockSpec((n_det * n_dn, n_dn * tb), lambda b: (0, b))),
        compiler_params=pltpu.CompilerParams(
            dimension_semantics=("parallel",),                      # megacore on v7x
            vmem_limit_bytes=int(max(32 << 20, _vmem_capacity_bytes() - (8 << 20)))),
        cost_estimate=pl.CostEstimate(flops=int(flops),
                                      transcendentals=int(transcend),
                                      bytes_accessed=int(bytes_acc)),
    )(single2d, pair2d, *weights)


# ------------------------------ model setup ------------------------------------

def init_params(key, cfg):
    n_el, n_up, n_atoms = cfg['n_el'], cfg['n_up'], cfg['n_atoms']
    n_down = n_el - n_up
    n_sh, n_ph, n_det, n_layers = cfg['n_sh'], cfg['n_ph'], cfg['n_det'], cfg['n_layers']
    s_in = 4 * n_atoms
    p_in = 4
    s_mixed_in = 4 * n_atoms + 4 * 2
    s_mixed = 3 * n_sh + 2 * n_ph
    ks = iter(jax.random.split(key, 64))
    nrm = lambda shape: (INIT * jax.random.normal(next(ks), shape)).astype(jnp.float32)
    eye3 = jnp.eye(3, dtype=jnp.float32)[None, None, None]
    params = {
        'r_atoms': jax.random.normal(next(ks), (1, n_atoms, 3), dtype=jnp.float32),
        'lin_split_in': nrm((2 * s_in, n_sh)),
        'stream_s0': nrm((s_mixed_in + 1, n_sh)),
        'stream_p0': nrm((p_in + 1, n_ph)),
        'single_splits': [nrm((2 * n_sh, n_sh)) for _ in range(n_layers)],
        'single_intermediate': [nrm((s_mixed - 2 * n_sh + 1, n_sh)) for _ in range(n_layers)],
        'pairwise_intermediate': [nrm((n_ph + 1, n_ph)) for _ in range(n_layers)],
        'env_up_linear': nrm((n_det, n_up, n_sh + 1)),
        'env_down_linear': nrm((n_det, n_down, n_sh + 1)),
        'env_up_sigma': eye3 + nrm((n_det, n_up, n_atoms, 3, 3)),
        'env_down_sigma': eye3 + nrm((n_det, n_down, n_atoms, 3, 3)),
        # torch code overwrites the normal init with ones:
        'env_up_pi': jnp.ones((n_det, n_up, n_atoms), jnp.float32),
        'env_down_pi': jnp.ones((n_det, n_down, n_atoms), jnp.float32),
    }
    return params


def ferminet_forward(params, walkers, cfg, nb_idx):
    n_el, n_up, n_atoms = cfg['n_el'], cfg['n_up'], cfg['n_atoms']
    n_dn = n_el - n_up
    n_sh, n_ph, n_det = cfg['n_sh'], cfg['n_ph'], cfg['n_det']
    fs0 = 4 * n_atoms
    NP = n_el * (n_el - 1)
    n = walkers.shape[0]

    # ---- inputs (compute_ae_vectors / compute_inputs), plain JAX ----
    # TODO(synk): norms have no epsilon (matches torch forward); gradients would
    # need a safe-norm at coincident points.
    r_atoms = params['r_atoms']                                    # (1, n_atoms, 3)
    ae_b = walkers[:, :, None, :] - r_atoms[:, None, :, :]         # (n, n_el, n_atoms, 3)
    ae_dist = jnp.linalg.norm(ae_b, axis=-1, keepdims=True)
    single_b = jnp.concatenate([ae_b, ae_dist], axis=-1).reshape(n, n_el, fs0)

    w_t = jnp.transpose(walkers, (1, 0, 2))                        # (n_el, n, 3)
    ee = w_t[:, None, :, :] - w_t[None, :, :, :]                   # (n_el, n_el, n, 3)
    ee_nb = ee[np.arange(n_el)[:, None], nb_idx]                   # (n_el, n_el-1, n, 3)
    ee_dist = jnp.linalg.norm(ee_nb, axis=-1, keepdims=True)
    pair_b = jnp.concatenate([ee_nb, ee_dist], axis=-1)            # (n_el, n_el-1, n, 4)

    # ---- walker block / padding: batch goes on the lane axis inside the kernel
    tb, n_pad = _pick_block(n, _per_walker_vmem_bytes(cfg))
    nb = n_pad // tb
    pad = n_pad - n

    single2d = (jnp.pad(single_b, ((0, pad), (0, 0), (0, 0)))
                .reshape(nb, tb, n_el, fs0)
                .transpose(3, 0, 2, 1)                      # (fs0, nb, n_el, tb)
                .reshape(fs0, nb * n_el * tb))
    pair2d = (jnp.pad(pair_b, ((0, 0), (0, 0), (0, pad), (0, 0)))
              .reshape(n_el, n_el - 1, nb, tb, 4)
              .transpose(4, 2, 0, 1, 3)                     # (4, nb, n_el, n_el-1, tb)
              .reshape(4, nb * NP * tb))

    # ---- weights in kernel layout (transposed so each layer is weight^T @ acts)
    w_sp0 = params['lin_split_in'].T                               # (n_sh, 2*fs0)
    w_s0 = params['stream_s0'].T                                   # (n_sh, fs0+9)
    w_p0 = params['stream_p0'].T                                   # (n_ph, 5)
    w_spl = jnp.stack(params['single_splits']).transpose(0, 2, 1)
    w_sl = jnp.stack(params['single_intermediate']).transpose(0, 2, 1)
    w_pl = jnp.stack(params['pairwise_intermediate']).transpose(0, 2, 1)
    w_eu = params['env_up_linear'].reshape(n_det * n_up, n_sh + 1)
    w_ed = params['env_down_linear'].reshape(n_det * n_dn, n_sh + 1)
    weights = (w_sp0, w_s0, w_p0, w_spl, w_sl, w_pl, w_eu, w_ed)

    # ---- one fused Pallas kernel for the whole stream network ----
    fac_up2d, fac_dn2d = stream_network(single2d, pair2d, weights, cfg, tb, nb)
    factor_up = (fac_up2d.reshape(n_det, n_up, nb, n_up, tb)
                 .transpose(2, 4, 3, 0, 1).reshape(n_pad, n_up, n_det, n_up)[:n])
    factor_dn = (fac_dn2d.reshape(n_det, n_dn, nb, n_dn, tb)
                 .transpose(2, 4, 3, 0, 1).reshape(n_pad, n_dn, n_det, n_dn)[:n])

    # ---- envelopes (sigma/pi) and determinants ----
    # TODO(synk): the sigma/pi contractions are tiny 3-vector einsums and slogdet
    # has no Pallas equivalent; both stay in plain JAX.
    def env_tail(factor, ae, sigma, pi):
        pa = jnp.einsum('njmv,kimvc->njkimc', ae, sigma)
        expo = jnp.exp(-jnp.linalg.norm(pa, axis=-1))              # (n,j,k,i,m)
        exp_c = jnp.einsum('njkim,kim->njki', expo, pi)
        return jnp.transpose(factor * exp_c, (0, 2, 1, 3))          # (n,k,j,i)

    up_orb = env_tail(factor_up, ae_b[:, :n_up],
                      params['env_up_sigma'], params['env_up_pi'])
    down_orb = env_tail(factor_dn, ae_b[:, n_up:],
                        params['env_down_sigma'], params['env_down_pi'])

    sa, loga = jnp.linalg.slogdet(up_orb)
    sb, logb = jnp.linalg.slogdet(down_orb)
    log_sum = loga + logb
    log_sum_max = jnp.max(log_sum, axis=1, keepdims=True)
    logpsi = (jnp.log(jnp.abs(jnp.sum(sa * sb * jnp.exp(log_sum - log_sum_max), axis=1)))
              + jnp.squeeze(log_sum_max, axis=-1))
    return logpsi


# ------------------------------------ main ------------------------------------

if __name__ == "__main__":
    cfg = dict(n_el=4, n_up=2, n_atoms=1, n_layers=2, n_sh=32, n_ph=8, n_det=2)

    key = jax.random.PRNGKey(0)
    k_params, k_walk = jax.random.split(key)
    params = init_params(k_params, cfg)
    walkers = jax.random.normal(k_walk, (2, cfg['n_el'], 3), dtype=jnp.float32)

    # off-diagonal neighbour indices, i-major with j increasing (torch ordering)
    nb_idx = np.stack([[j for j in range(cfg['n_el']) if j != i]
                       for i in range(cfg['n_el'])]).astype(np.int32)

    fwd = jax.jit(functools.partial(ferminet_forward, cfg=cfg, nb_idx=nb_idx))
    log_psi = fwd(params, walkers)
    jax.block_until_ready(log_psi)
    assert log_psi.shape == (2,) and log_psi.dtype == jnp.float32
    print("KERNEL_OK")
</pallas_src>

<mosaic_0001>
module attributes {stable_mosaic.version = 11 : i64} {
  func.func @kernel(%arg0: i32, %arg1: memref<4x8xf32, #tpu.memory_space<vmem>>, %arg2: memref<4x24xf32, #tpu.memory_space<vmem>>, %arg3: memref<32x8xf32, #tpu.memory_space<vmem>>, %arg4: memref<32x13xf32, #tpu.memory_space<vmem>>, %arg5: memref<8x5xf32, #tpu.memory_space<vmem>>, %arg6: memref<2x32x64xf32, #tpu.memory_space<vmem>>, %arg7: memref<2x32x49xf32, #tpu.memory_space<vmem>>, %arg8: memref<2x8x9xf32, #tpu.memory_space<vmem>>, %arg9: memref<4x33xf32, #tpu.memory_space<vmem>>, %arg10: memref<4x33xf32, #tpu.memory_space<vmem>>, %arg11: memref<4x4xf32, #tpu.memory_space<vmem>>, %arg12: memref<4x4xf32, #tpu.memory_space<vmem>>) attributes {dimension_semantics = [#tpu.dimension_semantics<parallel>], iteration_bounds = array<i64: 1>, scalar_prefetch = 0 : i64, scratch_operands = 0 : i64, tpu.core_type = #tpu.core_type<tc>, window_params = [{transform_indices = @transform_0, window_bounds = array<i64: 4, 8>}, {transform_indices = @transform_1, window_bounds = array<i64: 4, 24>}, {pipeline_mode = #tpu.pipeline_mode<synchronous>, transform_indices = @transform_2, window_bounds = array<i64: 32, 8>}, {pipeline_mode = #tpu.pipeline_mode<synchronous>, transform_indices = @transform_3, window_bounds = array<i64: 32, 13>}, {pipeline_mode = #tpu.pipeline_mode<synchronous>, transform_indices = @transform_4, window_bounds = array<i64: 8, 5>}, {pipeline_mode = #tpu.pipeline_mode<synchronous>, transform_indices = @transform_5, window_bounds = array<i64: 2, 32, 64>}, {pipeline_mode = #tpu.pipeline_mode<synchronous>, transform_indices = @transform_6, window_bounds = array<i64: 2, 32, 49>}, {pipeline_mode = #tpu.pipeline_mode<synchronous>, transform_indices = @transform_7, window_bounds = array<i64: 2, 8, 9>}, {pipeline_mode = #tpu.pipeline_mode<synchronous>, transform_indices = @transform_8, window_bounds = array<i64: 4, 33>}, {pipeline_mode = #tpu.pipeline_mode<synchronous>, transform_indices = @transform_9, window_bounds = array<i64: 4, 33>}, {transform_indices = @transform_10, window_bounds = array<i64: 4, 4>}, {transform_indices = @transform_11, window_bounds = array<i64: 4, 4>}]} {
    %c0 = arith.constant 0 : index
    %c0_0 = arith.constant 0 : index
    %0 = vector.load %arg1[%c0, %c0_0] : memref<4x8xf32, #tpu.memory_space<vmem>>, vector<4x8xf32>
    %c0_1 = arith.constant 0 : index
    %c0_2 = arith.constant 0 : index
    %1 = vector.load %arg2[%c0_1, %c0_2] : memref<4x24xf32, #tpu.memory_space<vmem>>, vector<4x24xf32>
    %c0_3 = arith.constant 0 : index
    %c0_4 = arith.constant 0 : index
    %2 = vector.load %arg3[%c0_3, %c0_4] : memref<32x8xf32, #tpu.memory_space<vmem>>, vector<32x8xf32>
    %c0_5 = arith.constant 0 : index
    %c0_6 = arith.constant 0 : index
    %3 = vector.load %arg4[%c0_5, %c0_6] : memref<32x13xf32, #tpu.memory_space<vmem>>, vector<32x13xf32>
    %4 = vector.extract_strided_slice %0 {offsets = [0, 0], sizes = [4, 2], strides = [1, 1]} : vector<4x8xf32> to vector<4x2xf32>
    %5 = vector.extract_strided_slice %0 {offsets = [0, 2], sizes = [4, 2], strides = [1, 1]} : vector<4x8xf32> to vector<4x2xf32>
    %6 = arith.addf %4, %5 : vector<4x2xf32>
    %cst = arith.constant 5.000000e-01 : f32
    %7 = vector.broadcast %cst : f32 to vector<4x2xf32>
    %8 = arith.mulf %6, %7 : vector<4x2xf32>
    %9 = vector.extract_strided_slice %0 {offsets = [0, 4], sizes = [4, 2], strides = [1, 1]} : vector<4x8xf32> to vector<4x2xf32>
    %10 = vector.extract_strided_slice %0 {offsets = [0, 6], sizes = [4, 2], strides = [1, 1]} : vector<4x8xf32> to vector<4x2xf32>
    %11 = arith.addf %9, %10 : vector<4x2xf32>
    %cst_7 = arith.constant 5.000000e-01 : f32
    %12 = vector.broadcast %cst_7 : f32 to vector<4x2xf32>
    %13 = arith.mulf %11, %12 : vector<4x2xf32>
    %14 = vector.extract_strided_slice %1 {offsets = [0, 0], sizes = [4, 2], strides = [1, 1]} : vector<4x24xf32> to vector<4x2xf32>
    %cst_8 = arith.constant 5.000000e-01 : f32
    %15 = vector.broadcast %cst_8 : f32 to vector<4x2xf32>
    %16 = arith.mulf %14, %15 : vector<4x2xf32>
    %17 = vector.extract_strided_slice %1 {offsets = [0, 2], sizes = [4, 2], strides = [1, 1]} : vector<4x24xf32> to vector<4x2xf32>
    %18 = vector.extract_strided_slice %1 {offsets = [0, 4], sizes = [4, 2], strides = [1, 1]} : vector<4x24xf32> to vector<4x2xf32>
    %19 = arith.addf %17, %18 : vector<4x2xf32>
    %cst_9 = arith.constant 5.000000e-01 : f32
    %20 = vector.broadcast %cst_9 : f32 to vector<4x2xf32>
    %21 = arith.mulf %19, %20 : vector<4x2xf32>
    %22 = vector.extract_strided_slice %1 {offsets = [0, 6], sizes = [4, 2], strides = [1, 1]} : vector<4x24xf32> to vector<4x2xf32>
    %cst_10 = arith.constant 5.000000e-01 : f32
    %23 = vector.broadcast %cst_10 : f32 to vector<4x2xf32>
    %24 = arith.mulf %22, %23 : vector<4x2xf32>
    %25 = vector.extract_strided_slice %1 {offsets = [0, 8], sizes = [4, 2], strides = [1, 1]} : vector<4x24xf32> to vector<4x2xf32>
    %26 = vector.extract_strided_slice %1 {offsets = [0, 10], sizes = [4, 2], strides = [1, 1]} : vector<4x24xf32> to vector<4x2xf32>
    %27 = arith.addf %25, %26 : vector<4x2xf32>
    %cst_11 = arith.constant 5.000000e-01 : f32
    %28 = vector.broadcast %cst_11 : f32 to vector<4x2xf32>
    %29 = arith.mulf %27, %28 : vector<4x2xf32>
    %30 = vector.extract_strided_slice %1 {offsets = [0, 12], sizes = [4, 2], strides = [1, 1]} : vector<4x24xf32> to vector<4x2xf32>
    %31 = vector.extract_strided_slice %1 {offsets = [0, 14], sizes = [4, 2], strides = [1, 1]} : vector<4x24xf32> to vector<4x2xf32>
    %32 = arith.addf %30, %31 : vector<4x2xf32>
    %cst_12 = arith.constant 5.000000e-01 : f32
    %33 = vector.broadcast %cst_12 : f32 to vector<4x2xf32>
    %34 = arith.mulf %32, %33 : vector<4x2xf32>
    %35 = vector.extract_strided_slice %1 {offsets = [0, 16], sizes = [4, 2], strides = [1, 1]} : vector<4x24xf32> to vector<4x2xf32>
    %cst_13 = arith.constant 5.000000e-01 : f32
    %36 = vector.broadcast %cst_13 : f32 to vector<4x2xf32>
    %37 = arith.mulf %35, %36 : vector<4x2xf32>
    %38 = vector.extract_strided_slice %1 {offsets = [0, 18], sizes = [4, 2], strides = [1, 1]} : vector<4x24xf32> to vector<4x2xf32>
    %39 = vector.extract_strided_slice %1 {offsets = [0, 20], sizes = [4, 2], strides = [1, 1]} : vector<4x24xf32> to vector<4x2xf32>
    %40 = arith.addf %38, %39 : vector<4x2xf32>
    %cst_14 = arith.constant 5.000000e-01 : f32
    %41 = vector.broadcast %cst_14 : f32 to vector<4x2xf32>
    %42 = arith.mulf %40, %41 : vector<4x2xf32>
    %43 = vector.extract_strided_slice %1 {offsets = [0, 22], sizes = [4, 2], strides = [1, 1]} : vector<4x24xf32> to vector<4x2xf32>
    %cst_15 = arith.constant 5.000000e-01 : f32
    %44 = vector.broadcast %cst_15 : f32 to vector<4x2xf32>
    %45 = arith.mulf %43, %44 : vector<4x2xf32>
    %46 = tpu.concatenate %16, %24, %34, %42 in 1 : vector<4x2xf32>, vector<4x2xf32>, vector<4x2xf32>, vector<4x2xf32> -> vector<4x8xf32>
    %47 = tpu.concatenate %21, %29, %37, %45 in 1 : vector<4x2xf32>, vector<4x2xf32>, vector<4x2xf32>, vector<4x2xf32> -> vector<4x8xf32>
    %48 = vector.extract_strided_slice %2 {offsets = [0, 0], sizes = [32, 4], strides = [1, 1]} : vector<32x8xf32> to vector<32x4xf32>
    %cst_16 = arith.constant dense<0.000000e+00> : vector<32x2xf32>
    %49 = tpu.matmul %48, %8, %cst_16 {dimension_numbers = #tpu.dot_dimension_numbers<[1], [0], [0], [1], [0, 0, 1, 1], [], []>} : vector<32x4xf32>, vector<4x2xf32>, vector<32x2xf32> -> vector<32x2xf32>
    %50 = vector.extract_strided_slice %2 {offsets = [0, 4], sizes = [32, 4], strides = [1, 1]} : vector<32x8xf32> to vector<32x4xf32>
    %cst_17 = arith.constant dense<0.000000e+00> : vector<32x2xf32>
    %51 = tpu.matmul %50, %13, %cst_17 {dimension_numbers = #tpu.dot_dimension_numbers<[1], [0], [0], [1], [0, 0, 1, 1], [], []>} : vector<32x4xf32>, vector<4x2xf32>, vector<32x2xf32> -> vector<32x2xf32>
    %52 = arith.addf %49, %51 : vector<32x2xf32>
    %53 = vector.extract_strided_slice %3 {offsets = [0, 12], sizes = [32, 1], strides = [1, 1]} : vector<32x13xf32> to vector<32x1xf32>
    %54 = vector.broadcast %53 : vector<32x1xf32> to vector<32x2xf32>
    %55 = arith.addf %54, %52 : vector<32x2xf32>
    %56 = vector.extract_strided_slice %3 {offsets = [0, 0], sizes = [32, 4], strides = [1, 1]} : vector<32x13xf32> to vector<32x4xf32>
    %cst_18 = arith.constant dense<0.000000e+00> : vector<32x8xf32>
    %57 = tpu.matmul %56, %0, %cst_18 {dimension_numbers = #tpu.dot_dimension_numbers<[1], [0], [0], [1], [0, 0, 1, 1], [], []>} : vector<32x4xf32>, vector<4x8xf32>, vector<32x8xf32> -> vector<32x8xf32>
    %58 = vector.extract_strided_slice %3 {offsets = [0, 4], sizes = [32, 4], strides = [1, 1]} : vector<32x13xf32> to vector<32x4xf32>
    %cst_19 = arith.constant dense<0.000000e+00> : vector<32x8xf32>
    %59 = tpu.matmul %58, %46, %cst_19 {dimension_numbers = #tpu.dot_dimension_numbers<[1], [0], [0], [1], [0, 0, 1, 1], [], []>} : vector<32x4xf32>, vector<4x8xf32>, vector<32x8xf32> -> vector<32x8xf32>
    %60 = arith.addf %57, %59 : vector<32x8xf32>
    %61 = vector.extract_strided_slice %3 {offsets = [0, 8], sizes = [32, 4], strides = [1, 1]} : vector<32x13xf32> to vector<32x4xf32>
    %cst_20 = arith.constant dense<0.000000e+00> : vector<32x8xf32>
    %62 = tpu.matmul %61, %47, %cst_20 {dimension_numbers = #tpu.dot_dimension_numbers<[1], [0], [0], [1], [0, 0, 1, 1], [], []>} : vector<32x4xf32>, vector<4x8xf32>, vector<32x8xf32> -> vector<32x8xf32>
    %63 = arith.addf %60, %62 : vector<32x8xf32>
    %64 = tpu.concatenate %55, %55, %55, %55 in 1 : vector<32x2xf32>, vector<32x2xf32>, vector<32x2xf32>, vector<32x2xf32> -> vector<32x8xf32>
    %65 = arith.addf %63, %64 : vector<32x8xf32>
    %66 = math.tanh %65 : vector<32x8xf32>
    %c0_21 = arith.constant 0 : index
    %c0_22 = arith.constant 0 : index
    %67 = vector.load %arg2[%c0_21, %c0_22] : memref<4x24xf32, #tpu.memory_space<vmem>>, vector<4x24xf32>
    %c0_23 = arith.constant 0 : index
    %c0_24 = arith.constant 0 : index
    %68 = vector.load %arg5[%c0_23, %c0_24] : memref<8x5xf32, #tpu.memory_space<vmem>>, vector<8x5xf32>
    %69 = vector.extract_strided_slice %68 {offsets = [0, 0], sizes = [8, 4], strides = [1, 1]} : vector<8x5xf32> to vector<8x4xf32>
    %cst_25 = arith.constant dense<0.000000e+00> : vector<8x24xf32>
    %70 = tpu.matmul %69, %67, %cst_25 {dimension_numbers = #tpu.dot_dimension_numbers<[1], [0], [0], [1], [0, 0, 1, 1], [], []>} : vector<8x4xf32>, vector<4x24xf32>, vector<8x24xf32> -> vector<8x24xf32>
    %71 = vector.extract_strided_slice %68 {offsets = [0, 4], sizes = [8, 1], strides = [1, 1]} : vector<8x5xf32> to vector<8x1xf32>
    %72 = vector.broadcast %71 : vector<8x1xf32> to vector<8x24xf32>
    %73 = arith.addf %70, %72 : vector<8x24xf32>
    %74 = math.tanh %73 : vector<8x24xf32>
    %c0_i32 = arith.constant 0 : i32
    %75 = arith.index_cast %c0_i32 : i32 to index
    %c0_26 = arith.constant 0 : index
    %c0_27 = arith.constant 0 : index
    %76 = vector.load %arg6[%75, %c0_26, %c0_27] : memref<2x32x64xf32, #tpu.memory_space<vmem>>, vector<1x32x64xf32>
    %77 = vector.shape_cast %76 : vector<1x32x64xf32> to vector<32x64xf32>
    %78 = arith.index_cast %c0_i32 : i32 to index
    %c0_28 = arith.constant 0 : index
    %c0_29 = arith.constant 0 : index
    %79 = vector.load %arg7[%78, %c0_28, %c0_29] : memref<2x32x49xf32, #tpu.memory_space<vmem>>, vector<1x32x49xf32>
    %80 = vector.shape_cast %79 : vector<1x32x49xf32> to vector<32x49xf32>
    %81 = vector.extract_strided_slice %66 {offsets = [0, 0], sizes = [32, 2], strides = [1, 1]} : vector<32x8xf32> to vector<32x2xf32>
    %82 = vector.extract_strided_slice %66 {offsets = [0, 2], sizes = [32, 2], strides = [1, 1]} : vector<32x8xf32> to vector<32x2xf32>
    %83 = arith.addf %81, %82 : vector<32x2xf32>
    %cst_30 = arith.constant 5.000000e-01 : f32
    %84 = vector.broadcast %cst_30 : f32 to vector<32x2xf32>
    %85 = arith.mulf %83, %84 : vector<32x2xf32>
    %86 = vector.extract_strided_slice %66 {offsets = [0, 4], sizes = [32, 2], strides = [1, 1]} : vector<32x8xf32> to vector<32x2xf32>
    %87 = vector.extract_strided_slice %66 {offsets = [0, 6], sizes = [32, 2], strides = [1, 1]} : vector<32x8xf32> to vector<32x2xf32>
    %88 = arith.addf %86, %87 : vector<32x2xf32>
    %cst_31 = arith.constant 5.000000e-01 : f32
    %89 = vector.broadcast %cst_31 : f32 to vector<32x2xf32>
    %90 = arith.mulf %88, %89 : vector<32x2xf32>
    %91 = vector.extract_strided_slice %74 {offsets = [0, 0], sizes = [8, 2], strides = [1, 1]} : vector<8x24xf32> to vector<8x2xf32>
    %cst_32 = arith.constant 5.000000e-01 : f32
    %92 = vector.broadcast %cst_32 : f32 to vector<8x2xf32>
    %93 = arith.mulf %91, %92 : vector<8x2xf32>
    %94 = vector.extract_strided_slice %74 {offsets = [0, 2], sizes = [8, 2], strides = [1, 1]} : vector<8x24xf32> to vector<8x2xf32>
    %95 = vector.extract_strided_slice %74 {offsets = [0, 4], sizes = [8, 2], strides = [1, 1]} : vector<8x24xf32> to vector<8x2xf32>
    %96 = arith.addf %94, %95 : vector<8x2xf32>
    %cst_33 = arith.constant 5.000000e-01 : f32
    %97 = vector.broadcast %cst_33 : f32 to vector<8x2xf32>
    %98 = arith.mulf %96, %97 : vector<8x2xf32>
    %99 = vector.extract_strided_slice %74 {offsets = [0, 6], sizes = [8, 2], strides = [1, 1]} : vector<8x24xf32> to vector<8x2xf32>
    %cst_34 = arith.constant 5.000000e-01 : f32
    %100 = vector.broadcast %cst_34 : f32 to vector<8x2xf32>
    %101 = arith.mulf %99, %100 : vector<8x2xf32>
    %102 = vector.extract_strided_slice %74 {offsets = [0, 8], sizes = [8, 2], strides = [1, 1]} : vector<8x24xf32> to vector<8x2xf32>
    %103 = vector.extract_strided_slice %74 {offsets = [0, 10], sizes = [8, 2], strides = [1, 1]} : vector<8x24xf32> to vector<8x2xf32>
    %104 = arith.addf %102, %103 : vector<8x2xf32>
    %cst_35 = arith.constant 5.000000e-01 : f32
    %105 = vector.broadcast %cst_35 : f32 to vector<8x2xf32>
    %106 = arith.mulf %104, %105 : vector<8x2xf32>
    %107 = vector.extract_strided_slice %74 {offsets = [0, 12], sizes = [8, 2], strides = [1, 1]} : vector<8x24xf32> to vector<8x2xf32>
    %108 = vector.extract_strided_slice %74 {offsets = [0, 14], sizes = [8, 2], strides = [1, 1]} : vector<8x24xf32> to vector<8x2xf32>
    %109 = arith.addf %107, %108 : vector<8x2xf32>
    %cst_36 = arith.constant 5.000000e-01 : f32
    %110 = vector.broadcast %cst_36 : f32 to vector<8x2xf32>
    %111 = arith.mulf %109, %110 : vector<8x2xf32>
    %112 = vector.extract_strided_slice %74 {offsets = [0, 16], sizes = [8, 2], strides = [1, 1]} : vector<8x24xf32> to vector<8x2xf32>
    %cst_37 = arith.constant 5.000000e-01 : f32
    %113 = vector.broadcast %cst_37 : f32 to vector<8x2xf32>
    %114 = arith.mulf %112, %113 : vector<8x2xf32>
    %115 = vector.extract_strided_slice %74 {offsets = [0, 18], sizes = [8, 2], strides = [1, 1]} : vector<8x24xf32> to vector<8x2xf32>
    %116 = vector.extract_strided_slice %74 {offsets = [0, 20], sizes = [8, 2], strides = [1, 1]} : vector<8x24xf32> to vector<8x2xf32>
    %117 = arith.addf %115, %116 : vector<8x2xf32>
    %cst_38 = arith.constant 5.000000e-01 : f32
    %118 = vector.broadcast %cst_38 : f32 to vector<8x2xf32>
    %119 = arith.mulf %117, %118 : vector<8x2xf32>
    %120 = vector.extract_strided_slice %74 {offsets = [0, 22], sizes = [8, 2], strides = [1, 1]} : vector<8x24xf32> to vector<8x2xf32>
    %cst_39 = arith.constant 5.000000e-01 : f32
    %121 = vector.broadcast %cst_39 : f32 to vector<8x2xf32>
    %122 = arith.mulf %120, %121 : vector<8x2xf32>
    %123 = tpu.concatenate %93, %101, %111, %119 in 1 : vector<8x2xf32>, vector<8x2xf32>, vector<8x2xf32>, vector<8x2xf32> -> vector<8x8xf32>
    %124 = tpu.concatenate %98, %106, %114, %122 in 1 : vector<8x2xf32>, vector<8x2xf32>, vector<8x2xf32>, vector<8x2xf32> -> vector<8x8xf32>
    %125 = vector.extract_strided_slice %77 {offsets = [0, 0], sizes = [32, 32], strides = [1, 1]} : vector<32x64xf32> to vector<32x32xf32>
    %cst_40 = arith.constant dense<0.000000e+00> : vector<32x2xf32>
    %126 = tpu.matmul %125, %85, %cst_40 {dimension_numbers = #tpu.dot_dimension_numbers<[1], [0], [0], [1], [0, 0, 1, 1], [], []>} : vector<32x32xf32>, vector<32x2xf32>, vector<32x2xf32> -> vector<32x2xf32>
    %127 = vector.extract_strided_slice %77 {offsets = [0, 32], sizes = [32, 32], strides = [1, 1]} : vector<32x64xf32> to vector<32x32xf32>
    %cst_41 = arith.constant dense<0.000000e+00> : vector<32x2xf32>
    %128 = tpu.matmul %127, %90, %cst_41 {dimension_numbers = #tpu.dot_dimension_numbers<[1], [0], [0], [1], [0, 0, 1, 1], [], []>} : vector<32x32xf32>, vector<32x2xf32>, vector<32x2xf32> -> vector<32x2xf32>
    %129 = arith.addf %126, %128 : vector<32x2xf32>
    %130 = vector.extract_strided_slice %80 {offsets = [0, 48], sizes = [32, 1], strides = [1, 1]} : vector<32x49xf32> to vector<32x1xf32>
    %131 = vector.broadcast %130 : vector<32x1xf32> to vector<32x2xf32>
    %132 = arith.addf %131, %129 : vector<32x2xf32>
    %133 = vector.extract_strided_slice %80 {offsets = [0, 0], sizes = [32, 32], strides = [1, 1]} : vector<32x49xf32> to vector<32x32xf32>
    %cst_42 = arith.constant dense<0.000000e+00> : vector<32x8xf32>
    %134 = tpu.matmul %133, %66, %cst_42 {dimension_numbers = #tpu.dot_dimension_numbers<[1], [0], [0], [1], [0, 0, 1, 1], [], []>} : vector<32x32xf32>, vector<32x8xf32>, vector<32x8xf32> -> vector<32x8xf32>
    %135 = vector.extract_strided_slice %80 {offsets = [0, 32], sizes = [32, 8], strides = [1, 1]} : vector<32x49xf32> to vector<32x8xf32>
    %cst_43 = arith.constant dense<0.000000e+00> : vector<32x8xf32>
    %136 = tpu.matmul %135, %123, %cst_43 {dimension_numbers = #tpu.dot_dimension_numbers<[1], [0], [0], [1], [0, 0, 1, 1], [], []>} : vector<32x8xf32>, vector<8x8xf32>, vector<32x8xf32> -> vector<32x8xf32>
    %137 = arith.addf %134, %136 : vector<32x8xf32>
    %138 = vector.extract_strided_slice %80 {offsets = [0, 40], sizes = [32, 8], strides = [1, 1]} : vector<32x49xf32> to vector<32x8xf32>
    %cst_44 = arith.constant dense<0.000000e+00> : vector<32x8xf32>
    %139 = tpu.matmul %138, %124, %cst_44 {dimension_numbers = #tpu.dot_dimension_numbers<[1], [0], [0], [1], [0, 0, 1, 1], [], []>} : vector<32x8xf32>, vector<8x8xf32>, vector<32x8xf32> -> vector<32x8xf32>
    %140 = arith.addf %137, %139 : vector<32x8xf32>
    %141 = tpu.concatenate %132, %132, %132, %132 in 1 : vector<32x2xf32>, vector<32x2xf32>, vector<32x2xf32>, vector<32x2xf32> -> vector<32x8xf32>
    %142 = arith.addf %140, %141 : vector<32x8xf32>
    %143 = math.tanh %142 : vector<32x8xf32>
    %144 = arith.addf %143, %66 : vector<32x8xf32>
    %145 = arith.index_cast %c0_i32 : i32 to index
    %c0_45 = arith.constant 0 : index
    %c0_46 = arith.constant 0 : index
    %146 = vector.load %arg8[%145, %c0_45, %c0_46] : memref<2x8x9xf32, #tpu.memory_space<vmem>>, vector<1x8x9xf32>
    %147 = vector.shape_cast %146 : vector<1x8x9xf32> to vector<8x9xf32>
    %148 = vector.extract_strided_slice %147 {offsets = [0, 0], sizes = [8, 8], strides = [1, 1]} : vector<8x9xf32> to vector<8x8xf32>
    %cst_47 = arith.constant dense<0.000000e+00> : vector<8x24xf32>
    %149 = tpu.matmul %148, %74, %cst_47 {dimension_numbers = #tpu.dot_dimension_numbers<[1], [0], [0], [1], [0, 0, 1, 1], [], []>} : vector<8x8xf32>, vector<8x24xf32>, vector<8x24xf32> -> vector<8x24xf32>
    %150 = vector.extract_strided_slice %147 {offsets = [0, 8], sizes = [8, 1], strides = [1, 1]} : vector<8x9xf32> to vector<8x1xf32>
    %151 = vector.broadcast %150 : vector<8x1xf32> to vector<8x24xf32>
    %152 = arith.addf %149, %151 : vector<8x24xf32>
    %153 = math.tanh %152 : vector<8x24xf32>
    %154 = arith.addf %153, %74 : vector<8x24xf32>
    %c1_i32 = arith.constant 1 : i32
    %c1 = arith.constant 1 : index
    %c0_48 = arith.constant 0 : index
    %c0_49 = arith.constant 0 : index
    %155 = vector.load %arg6[%c1, %c0_48, %c0_49] : memref<2x32x64xf32, #tpu.memory_space<vmem>>, vector<1x32x64xf32>
    %156 = vector.shape_cast %155 : vector<1x32x64xf32> to vector<32x64xf32>
    %c1_50 = arith.constant 1 : index
    %c0_51 = arith.constant 0 : index
    %c0_52 = arith.constant 0 : index
    %157 = vector.load %arg7[%c1_50, %c0_51, %c0_52] : memref<2x32x49xf32, #tpu.memory_space<vmem>>, vector<1x32x49xf32>
    %158 = vector.shape_cast %157 : vector<1x32x49xf32> to vector<32x49xf32>
    %159 = vector.extract_strided_slice %144 {offsets = [0, 0], sizes = [32, 2], strides = [1, 1]} : vector<32x8xf32> to vector<32x2xf32>
    %160 = vector.extract_strided_slice %144 {offsets = [0, 2], sizes = [32, 2], strides = [1, 1]} : vector<32x8xf32> to vector<32x2xf32>
    %161 = arith.addf %159, %160 : vector<32x2xf32>
    %cst_53 = arith.constant 5.000000e-01 : f32
    %162 = vector.broadcast %cst_53 : f32 to vector<32x2xf32>
    %163 = arith.mulf %161, %162 : vector<32x2xf32>
    %164 = vector.extract_strided_slice %144 {offsets = [0, 4], sizes = [32, 2], strides = [1, 1]} : vector<32x8xf32> to vector<32x2xf32>
    %165 = vector.extract_strided_slice %144 {offsets = [0, 6], sizes = [32, 2], strides = [1, 1]} : vector<32x8xf32> to vector<32x2xf32>
    %166 = arith.addf %164, %165 : vector<32x2xf32>
    %cst_54 = arith.constant 5.000000e-01 : f32
    %167 = vector.broadcast %cst_54 : f32 to vector<32x2xf32>
    %168 = arith.mulf %166, %167 : vector<32x2xf32>
    %169 = vector.extract_strided_slice %154 {offsets = [0, 0], sizes = [8, 2], strides = [1, 1]} : vector<8x24xf32> to vector<8x2xf32>
    %cst_55 = arith.constant 5.000000e-01 : f32
    %170 = vector.broadcast %cst_55 : f32 to vector<8x2xf32>
    %171 = arith.mulf %169, %170 : vector<8x2xf32>
    %172 = vector.extract_strided_slice %154 {offsets = [0, 2], sizes = [8, 2], strides = [1, 1]} : vector<8x24xf32> to vector<8x2xf32>
    %173 = vector.extract_strided_slice %154 {offsets = [0, 4], sizes = [8, 2], strides = [1, 1]} : vector<8x24xf32> to vector<8x2xf32>
    %174 = arith.addf %172, %173 : vector<8x2xf32>
    %cst_56 = arith.constant 5.000000e-01 : f32
    %175 = vector.broadcast %cst_56 : f32 to vector<8x2xf32>
    %176 = arith.mulf %174, %175 : vector<8x2xf32>
    %177 = vector.extract_strided_slice %154 {offsets = [0, 6], sizes = [8, 2], strides = [1, 1]} : vector<8x24xf32> to vector<8x2xf32>
    %cst_57 = arith.constant 5.000000e-01 : f32
    %178 = vector.broadcast %cst_57 : f32 to vector<8x2xf32>
    %179 = arith.mulf %177, %178 : vector<8x2xf32>
    %180 = vector.extract_strided_slice %154 {offsets = [0, 8], sizes = [8, 2], strides = [1, 1]} : vector<8x24xf32> to vector<8x2xf32>
    %181 = vector.extract_strided_slice %154 {offsets = [0, 10], sizes = [8, 2], strides = [1, 1]} : vector<8x24xf32> to vector<8x2xf32>
    %182 = arith.addf %180, %181 : vector<8x2xf32>
    %cst_58 = arith.constant 5.000000e-01 : f32
    %183 = vector.broadcast %cst_58 : f32 to vector<8x2xf32>
    %184 = arith.mulf %182, %183 : vector<8x2xf32>
    %185 = vector.extract_strided_slice %154 {offsets = [0, 12], sizes = [8, 2], strides = [1, 1]} : vector<8x24xf32> to vector<8x2xf32>
    %186 = vector.extract_strided_slice %154 {offsets = [0, 14], sizes = [8, 2], strides = [1, 1]} : vector<8x24xf32> to vector<8x2xf32>
    %187 = arith.addf %185, %186 : vector<8x2xf32>
    %cst_59 = arith.constant 5.000000e-01 : f32
    %188 = vector.broadcast %cst_59 : f32 to vector<8x2xf32>
    %189 = arith.mulf %187, %188 : vector<8x2xf32>
    %190 = vector.extract_strided_slice %154 {offsets = [0, 16], sizes = [8, 2], strides = [1, 1]} : vector<8x24xf32> to vector<8x2xf32>
    %cst_60 = arith.constant 5.000000e-01 : f32
    %191 = vector.broadcast %cst_60 : f32 to vector<8x2xf32>
    %192 = arith.mulf %190, %191 : vector<8x2xf32>
    %193 = vector.extract_strided_slice %154 {offsets = [0, 18], sizes = [8, 2], strides = [1, 1]} : vector<8x24xf32> to vector<8x2xf32>
    %194 = vector.extract_strided_slice %154 {offsets = [0, 20], sizes = [8, 2], strides = [1, 1]} : vector<8x24xf32> to vector<8x2xf32>
    %195 = arith.addf %193, %194 : vector<8x2xf32>
    %cst_61 = arith.constant 5.000000e-01 : f32
    %196 = vector.broadcast %cst_61 : f32 to vector<8x2xf32>
    %197 = arith.mulf %195, %196 : vector<8x2xf32>
    %198 = vector.extract_strided_slice %154 {offsets = [0, 22], sizes = [8, 2], strides = [1, 1]} : vector<8x24xf32> to vector<8x2xf32>
    %cst_62 = arith.constant 5.000000e-01 : f32
    %199 = vector.broadcast %cst_62 : f32 to vector<8x2xf32>
    %200 = arith.mulf %198, %199 : vector<8x2xf32>
    %201 = tpu.concatenate %171, %179, %189, %197 in 1 : vector<8x2xf32>, vector<8x2xf32>, vector<8x2xf32>, vector<8x2xf32> -> vector<8x8xf32>
    %202 = tpu.concatenate %176, %184, %192, %200 in 1 : vector<8x2xf32>, vector<8x2xf32>, vector<8x2xf32>, vector<8x2xf32> -> vector<8x8xf32>
    %203 = vector.extract_strided_slice %156 {offsets = [0, 0], sizes = [32, 32], strides = [1, 1]} : vector<32x64xf32> to vector<32x32xf32>
    %cst_63 = arith.constant dense<0.000000e+00> : vector<32x2xf32>
    %204 = tpu.matmul %203, %163, %cst_63 {dimension_numbers = #tpu.dot_dimension_numbers<[1], [0], [0], [1], [0, 0, 1, 1], [], []>} : vector<32x32xf32>, vector<32x2xf32>, vector<32x2xf32> -> vector<32x2xf32>
    %205 = vector.extract_strided_slice %156 {offsets = [0, 32], sizes = [32, 32], strides = [1, 1]} : vector<32x64xf32> to vector<32x32xf32>
    %cst_64 = arith.constant dense<0.000000e+00> : vector<32x2xf32>
    %206 = tpu.matmul %205, %168, %cst_64 {dimension_numbers = #tpu.dot_dimension_numbers<[1], [0], [0], [1], [0, 0, 1, 1], [], []>} : vector<32x32xf32>, vector<32x2xf32>, vector<32x2xf32> -> vector<32x2xf32>
    %207 = arith.addf %204, %206 : vector<32x2xf32>
    %208 = vector.extract_strided_slice %158 {offsets = [0, 48], sizes = [32, 1], strides = [1, 1]} : vector<32x49xf32> to vector<32x1xf32>
    %209 = vector.broadcast %208 : vector<32x1xf32> to vector<32x2xf32>
    %210 = arith.addf %209, %207 : vector<32x2xf32>
    %211 = vector.extract_strided_slice %158 {offsets = [0, 0], sizes = [32, 32], strides = [1, 1]} : vector<32x49xf32> to vector<32x32xf32>
    %cst_65 = arith.constant dense<0.000000e+00> : vector<32x8xf32>
    %212 = tpu.matmul %211, %144, %cst_65 {dimension_numbers = #tpu.dot_dimension_numbers<[1], [0], [0], [1], [0, 0, 1, 1], [], []>} : vector<32x32xf32>, vector<32x8xf32>, vector<32x8xf32> -> vector<32x8xf32>
    %213 = vector.extract_strided_slice %158 {offsets = [0, 32], sizes = [32, 8], strides = [1, 1]} : vector<32x49xf32> to vector<32x8xf32>
    %cst_66 = arith.constant dense<0.000000e+00> : vector<32x8xf32>
    %214 = tpu.matmul %213, %201, %cst_66 {dimension_numbers = #tpu.dot_dimension_numbers<[1], [0], [0], [1], [0, 0, 1, 1], [], []>} : vector<32x8xf32>, vector<8x8xf32>, vector<32x8xf32> -> vector<32x8xf32>
    %215 = arith.addf %212, %214 : vector<32x8xf32>
    %216 = vector.extract_strided_slice %158 {offsets = [0, 40], sizes = [32, 8], strides = [1, 1]} : vector<32x49xf32> to vector<32x8xf32>
    %cst_67 = arith.constant dense<0.000000e+00> : vector<32x8xf32>
    %217 = tpu.matmul %216, %202, %cst_67 {dimension_numbers = #tpu.dot_dimension_numbers<[1], [0], [0], [1], [0, 0, 1, 1], [], []>} : vector<32x8xf32>, vector<8x8xf32>, vector<32x8xf32> -> vector<32x8xf32>
    %218 = arith.addf %215, %217 : vector<32x8xf32>
    %219 = tpu.concatenate %210, %210, %210, %210 in 1 : vector<32x2xf32>, vector<32x2xf32>, vector<32x2xf32>, vector<32x2xf32> -> vector<32x8xf32>
    %220 = arith.addf %218, %219 : vector<32x8xf32>
    %221 = math.tanh %220 : vector<32x8xf32>
    %222 = arith.addf %221, %144 : vector<32x8xf32>
    %c0_68 = arith.constant 0 : index
    %c0_69 = arith.constant 0 : index
    %223 = vector.load %arg9[%c0_68, %c0_69] : memref<4x33xf32, #tpu.memory_space<vmem>>, vector<4x33xf32>
    %c0_70 = arith.constant 0 : index
    %c0_71 = arith.constant 0 : index
    %224 = vector.load %arg10[%c0_70, %c0_71] : memref<4x33xf32, #tpu.memory_space<vmem>>, vector<4x33xf32>
    %225 = vector.extract_strided_slice %223 {offsets = [0, 0], sizes = [4, 32], strides = [1, 1]} : vector<4x33xf32> to vector<4x32xf32>
    %226 = vector.extract_strided_slice %222 {offsets = [0, 0], sizes = [32, 4], strides = [1, 1]} : vector<32x8xf32> to vector<32x4xf32>
    %cst_72 = arith.constant dense<0.000000e+00> : vector<4x4xf32>
    %227 = tpu.matmul %225, %226, %cst_72 {dimension_numbers = #tpu.dot_dimension_numbers<[1], [0], [0], [1], [0, 0, 1, 1], [], []>} : vector<4x32xf32>, vector<32x4xf32>, vector<4x4xf32> -> vector<4x4xf32>
    %228 = vector.extract_strided_slice %223 {offsets = [0, 32], sizes = [4, 1], strides = [1, 1]} : vector<4x33xf32> to vector<4x1xf32>
    %229 = vector.broadcast %228 : vector<4x1xf32> to vector<4x4xf32>
    %230 = arith.addf %227, %229 : vector<4x4xf32>
    %c0_73 = arith.constant 0 : index
    %c0_74 = arith.constant 0 : index
    %231 = vector.load %arg11[%c0_73, %c0_74] : memref<4x4xf32, #tpu.memory_space<vmem>>, vector<4x4xf32>
    tpu.vector_store %arg11[%c0_73, %c0_74], %230 {strides = array<i32>} : memref<4x4xf32, #tpu.memory_space<vmem>>, vector<4x4xf32>,
    %232 = vector.extract_strided_slice %224 {offsets = [0, 0], sizes = [4, 32], strides = [1, 1]} : vector<4x33xf32> to vector<4x32xf32>
    %233 = vector.extract_strided_slice %222 {offsets = [0, 4], sizes = [32, 4], strides = [1, 1]} : vector<32x8xf32> to vector<32x4xf32>
    %cst_75 = arith.constant dense<0.000000e+00> : vector<4x4xf32>
    %234 = tpu.matmul %232, %233, %cst_75 {dimension_numbers = #tpu.dot_dimension_numbers<[1], [0], [0], [1], [0, 0, 1, 1], [], []>} : vector<4x32xf32>, vector<32x4xf32>, vector<4x4xf32> -> vector<4x4xf32>
    %235 = vector.extract_strided_slice %224 {offsets = [0, 32], sizes = [4, 1], strides = [1, 1]} : vector<4x33xf32> to vector<4x1xf32>
    %236 = vector.broadcast %235 : vector<4x1xf32> to vector<4x4xf32>
    %237 = arith.addf %234, %236 : vector<4x4xf32>
    %c0_76 = arith.constant 0 : index
    %c0_77 = arith.constant 0 : index
    %238 = vector.load %arg12[%c0_76, %c0_77] : memref<4x4xf32, #tpu.memory_space<vmem>>, vector<4x4xf32>
    tpu.vector_store %arg12[%c0_76, %c0_77], %237 {strides = array<i32>} : memref<4x4xf32, #tpu.memory_space<vmem>>, vector<4x4xf32>,
    return
  }
  func.func @transform_0(%arg0: i32) -> (i32, i32) {
    %c0_i32 = arith.constant 0 : i32
    %c0_i32_0 = arith.constant 0 : i32
    return %c0_i32, %arg0 : i32, i32
  }
  func.func @transform_1(%arg0: i32) -> (i32, i32) {
    %c0_i32 = arith.constant 0 : i32
    %c0_i32_0 = arith.constant 0 : i32
    return %c0_i32, %arg0 : i32, i32
  }
  func.func @transform_2(%arg0: i32) -> (i32, i32) {
    %c0_i32 = arith.constant 0 : i32
    %c0_i32_0 = arith.constant 0 : i32
    %c0_i32_1 = arith.constant 0 : i32
    return %c0_i32, %c0_i32_0 : i32, i32
  }
  func.func @transform_3(%arg0: i32) -> (i32, i32) {
    %c0_i32 = arith.constant 0 : i32
    %c0_i32_0 = arith.constant 0 : i32
    %c0_i32_1 = arith.constant 0 : i32
    return %c0_i32, %c0_i32_0 : i32, i32
  }
  func.func @transform_4(%arg0: i32) -> (i32, i32) {
    %c0_i32 = arith.constant 0 : i32
    %c0_i32_0 = arith.constant 0 : i32
    %c0_i32_1 = arith.constant 0 : i32
    return %c0_i32, %c0_i32_0 : i32, i32
  }
  func.func @transform_5(%arg0: i32) -> (i32, i32, i32) {
    %c0_i32 = arith.constant 0 : i32
    %c0_i32_0 = arith.constant 0 : i32
    %c0_i32_1 = arith.constant 0 : i32
    %c0_i32_2 = arith.constant 0 : i32
    return %c0_i32, %c0_i32_0, %c0_i32_1 : i32, i32, i32
  }
  func.func @transform_6(%arg0: i32) -> (i32, i32, i32) {
    %c0_i32 = arith.constant 0 : i32
    %c0_i32_0 = arith.constant 0 : i32
    %c0_i32_1 = arith.constant 0 : i32
    %c0_i32_2 = arith.constant 0 : i32
    return %c0_i32, %c0_i32_0, %c0_i32_1 : i32, i32, i32
  }
  func.func @transform_7(%arg0: i32) -> (i32, i32, i32) {
    %c0_i32 = arith.constant 0 : i32
    %c0_i32_0 = arith.constant 0 : i32
    %c0_i32_1 = arith.constant 0 : i32
    %c0_i32_2 = arith.constant 0 : i32
    return %c0_i32, %c0_i32_0, %c0_i32_1 : i32, i32, i32
  }
  func.func @transform_8(%arg0: i32) -> (i32, i32) {
    %c0_i32 = arith.constant 0 : i32
    %c0_i32_0 = arith.constant 0 : i32
    %c0_i32_1 = arith.constant 0 : i32
    return %c0_i32, %c0_i32_0 : i32, i32
  }
  func.func @transform_9(%arg0: i32) -> (i32, i32) {
    %c0_i32 = arith.constant 0 : i32
    %c0_i32_0 = arith.constant 0 : i32
    %c0_i32_1 = arith.constant 0 : i32
    return %c0_i32, %c0_i32_0 : i32, i32
  }
  func.func @transform_10(%arg0: i32) -> (i32, i32) {
    %c0_i32 = arith.constant 0 : i32
    %c0_i32_0 = arith.constant 0 : i32
    return %c0_i32, %arg0 : i32, i32
  }
  func.func @transform_11(%arg0: i32) -> (i32, i32) {
    %c0_i32 = arith.constant 0 : i32
    %c0_i32_0 = arith.constant 0 : i32
    return %c0_i32, %arg0 : i32, i32
  }
}

</mosaic_0001>

<bundles_post_ra>
// kernel: ferminet_forward.1
= control target key start
LH: loop header
LB: loop body
LE: loop exit
PB: predicated region body
PF: predicated region fallthrough
CT: control target
= control target key end

     0   :  { %s2930_s19 = smov 126   ;;  %s2931_s24 = smov 124   ;;  %v2933_v13 = vmov 12   ;;  %vm115_vm0 = vcmask 1043456   ;;  %vm73_vm1 = vcmask 31744   ;;  %v2937_v25 = vmov 0.0   ;;  %s3556_s0 = inlined_call_operand.vmem [shape: f32[4,8], index: 0, kind: input, shape index: {}]   ;;  %s3557_s1 = inlined_call_operand.vmem [shape: f32[4,24], index: 1, kind: input, shape index: {}]   ;;  %s3558_s2 = inlined_call_operand.vmem [shape: f32[32,8], index: 2, kind: input, shape index: {}]   ;;  %s3559_s3 = inlined_call_operand.vmem [shape: f32[32,13], index: 3, kind: input, shape index: {}]   ;;  %s3560_s4 = inlined_call_operand.vmem [shape: f32[8,5], index: 4, kind: input, shape index: {}]   ;;  %s3561_s5 = inlined_call_operand.vmem [shape: f32[2,32,64], index: 5, kind: input, shape index: {}]   ;;  %s3562_s6 = inlined_call_operand.vmem [shape: f32[2,32,49], index: 6, kind: input, shape index: {}]   ;;  %s3563_s7 = inlined_call_operand.vmem [shape: f32[2,8,9], index: 7, kind: input, shape index: {}]   ;;  %s3564_s8 = inlined_call_operand.vmem [shape: f32[4,33], index: 8, kind: input, shape index: {}]   ;;  %s3565_s9 = inlined_call_operand.vmem [shape: f32[4,33], index: 9, kind: input, shape index: {}]   ;;  %s3566_s10 = inlined_call_operand.vmem [shape: f32[4,4], index: 10, kind: output, shape index: {0}]   ;;  %s3567_s11 = inlined_call_operand.vmem [shape: f32[4,4], index: 11, kind: output, shape index: {1}]  }
   0x1   :  { %v3012_v0 = vld [vmem:[%s3556_s0] sm:$0xf]  ;;  %v3026_v2 = vld [vmem:[%s3558_s2 + $0x8] sm:$0xff]  ;;  %v3033_v3 = vld [vmem:[%s3558_s2 + $0x18] sm:$0xff]  ;;  %s2932_s27 = smov 120   ;;  %2864 = vset.pattern.permute.xlu1 %v2933_v13  ;;  %2863 = vset.pattern.permute.xlu0 %v2933_v13  ;;  %s2935_s20 = smov 122  }
   0x2   :  { %48 = vrot.lane.b32.xlu0 %v3012_v0, %s2930_s19  ;;  %v3019_v1 = vld [vmem:[%s3557_s1] sm:$0xf]  ;;  %v41_v11 = vld [vmem:[%s3558_s2 + $0x10] sm:$0xff]  ;;  %v3070_v16 = vld [vmem:[%s3559_s3 + $0x8] sm:$0xff]  ;;  %s2936_s21 = smov 112   ;;  %vm71_vm2 = vcmask 15360  }
   0x3   :  { %v39_v9 = vld [vmem:[%s3558_s2] sm:$0xff]  ;;  %v53_v14 = vmul.f32 0.5, %v3019_v1  ;;  %v3060_v15 = vld [vmem:[%s3559_s3 + $0x10] sm:$0xff]  ;;  %s2934_s2 = smov 116   ;;  %v3078_v17 = vld [vmem:[%s3559_s3 + $0x18] sm:$0xff]  ;;  %vm75_vm3 = vcmask 48128  }
   0x4   :  { %v3051_v12 = vld [vmem:[%s3559_s3] sm:$0xff]  ;;  %vm2938_vm4 = vmmov 0   ;;  %v2939_v46 = vmov 4   ;;  %s2941_s23 = smov 4   ;;  %s2942_s0 = smov 6   ;;  %vm866_vm5 = vcmask 261120  }
   0x5   :  { %v689_v34 = vld [vmem:[%s3560_s4] sm:$0xff]  ;;  %s2940_s4 = smov 2   ;;  %s2943_s26 = smov 96   ;;  %vm1085_vm6 = vcmask 64512   ;;  %vm2271_vm7 = vcmask 27648  }
   0x6   :  { %55 = vrot.lane.b32.xlu0 %v3019_v1, %s2930_s19  ;;  %s2945_s28 = smov 88  }
   0xa   :  { %98 = vrot.lane.b32.xlu0 %v3026_v2, %s2931_s24 }
   0xe   :  { %102 = vrot.lane.b32.xlu0 %v3033_v3, %s2931_s24 }
  0x74   :  { %v49_v4 = vpop.permute.xlu0 %48 }
  0x75   :  { %v51_v5 = vadd.f32 %v49_v4, %v3012_v0 }
  0x77   :  { %v52_v6 = vmul.f32 0.5, %v51_v5 }
  0x78   :  { %v56_v7 = vpop.permute.xlu0 %55 }
  0x79   :  { %105 = vrot.lane.b32.xlu1 %v52_v6, %s2931_s24  ;;  %v58_v8 = vadd.f32 %v56_v7, %v3019_v1 }
  0x7b   :  { %v59_v10 = vmul.f32 0.5, %v58_v8 }
  0x7c   :  { %v99_v18 = vpop.permute.xlu0 %98 }
  0x7d   :  { %96 = vrot.lane.b32.xlu1 %v39_v9, %s2931_s24  ;;  %65 = vrot.lane.b32.xlu0 %v59_v10, %s2932_s27 }
  0x80   :  { %v103_v20 = vpop.permute.xlu0 %102 }
  0x81   :  { %100 = vrot.lane.b32.xlu1 %v41_v11, %s2931_s24  ;;  %322 = vrot.lane.b32.xlu0 %v3051_v12, %s2931_s24 }
  0x85   :  { %61 = vrot.lane.b32.xlu1 %v53_v14, %s2931_s24  ;;  %326 = vrot.lane.b32.xlu0 %v3060_v15, %s2931_s24 }
  0x89   :  { %68 = vrot.lane.b32.xlu1 %v59_v10, %s2934_s2  ;;  %83 = vrot.lane.b32.xlu0 %v53_v14, %s2934_s2 }
  0x8d   :  { %324 = vrot.lane.b32.xlu1 %v3070_v16, %s2931_s24  ;;  %77 = vrot.lane.b32.xlu0 %v59_v10, %s2930_s19 }
  0x91   :  { %328 = vrot.lane.b32.xlu1 %v3078_v17, %s2931_s24  ;;  %521 = vrot.lane.b32.xlu0 %v3051_v12, %s2932_s27 }
  0x95   :  { %80 = vrot.lane.b32.xlu1 %v59_v10, %s2935_s20  ;;  %525 = vrot.lane.b32.xlu0 %v3060_v15, %s2932_s27 }
  0x99   :  { %86 = vrot.lane.b32.xlu1 %v53_v14, %s2936_s21  ;;  %300 = vperm.xlu0 %2863, %v3051_v12  }
  0x9d   :  { %523 = vrot.lane.b32.xlu1 %v3070_v16, %s2932_s27  ;;  %315 = vperm.xlu0 %2863, %v3078_v17  }
  0xa1   :  { %527 = vrot.lane.b32.xlu1 %v3078_v17, %s2932_s27 }
  0xa5   :  { %305 = vperm.xlu1 %2864, %v3070_v16  }
  0xa9   :  { %310 = vperm.xlu1 %2864, %v3060_v15  }
  0xad   :  { %2865 = vset.pattern.permute.xlu1 %v2939_v46 }
  0xeb   :  { %v106_v19 = vpop.permute.xlu1 %105 }
  0xec   :  { %2560 = vmatprep.subr.msk.mxu0 %vm115_vm0, %v106_v19 }
  0xed   :  { %2561 = vmatpush3.msk.msra.mxu0 %vm115_vm0, %v106_v19 }
  0xee   :  { %2568 = vmatprep.subr.msk.mxu0 %vm115_vm0, %v52_v6 }
  0xef   :  { %v97_v21 = vpop.permute.xlu1 %96  ;;  %v66_v22 = vpop.permute.xlu0 %65 }
  0xf0   :  { %2562 = vmatprep.mubr.msk.f32.mxu0 %vm73_vm1, %v97_v21 }
  0xf1   :  { %2563 = vmatmul.mubr.msk.f32.vlgmr.msra.gmra.mrb[0].mxu0 %vm73_vm1, %v99_v18 }
  0xf2   :  { %2569 = vmatpush3.msk.msra.mxu0 %vm115_vm0, %v52_v6 }
  0xf3   :  { %v101_v23 = vpop.permute.xlu1 %100  ;;  %v323_v24 = vpop.permute.xlu0 %322  ;;  %2600 = vmatprep.subr.mxu0 %v2937_v25 }
  0xf4   :  { %2565 = vmatprep.mubr.msk.f32.mxu0 %vm73_vm1, %v101_v23  ;;  %2578 = vmatprep.mubr.msk.f32.mxu1 %vm73_vm1, %v323_v24 }
  0xf5   :  { %2566 = vmatmul.mubr.msk.f32.gmra.mrb[2].mxu0 %vm73_vm1, %v103_v20 }
  0xf6   :  { %2570 = vmatprep.mubr.msk.f32.mxu0 %vm73_vm1, %v39_v9 }
  0xf7   :  { %v62_v26 = vpop.permute.xlu1 %61  ;;  %v327_v28 = vpop.permute.xlu0 %326 }
  0xf8   :  { %v72_v27 = vsel %vm71_vm2, %v53_v14, %v62_v26 }
  0xf9   :  { %2571 = vmatmul.mubr.msk.f32.vlgmr.msra.gmra.mrb[0].mxu0 %vm73_vm1, %v3026_v2  ;;  %v74_v29 = vsel %vm73_vm1, %v72_v27, %v66_v22 }
  0xfa   :  { %2573 = vmatprep.mubr.msk.f32.mxu0 %vm73_vm1, %v41_v11  ;;  %2601 = vmatpush3.msk.msra.mxu0 %vm115_vm0, %v3019_v1 }
  0xfb   :  { %v69_v30 = vpop.permute.xlu1 %68  ;;  %v84_v32 = vpop.permute.xlu0 %83 }
  0xfc   :  { %v76_v31 = vsel %vm75_vm3, %v74_v29, %v69_v30 }
  0xfd   :  { %2574 = vmatmul.mubr.msk.f32.gmra.mrb[2].mxu0 %vm73_vm1, %v3033_v3  ;;  %2576 = vmatprep.subr.msk.mxu1 %vm115_vm0, %v76_v31 }
  0xfe   :  { %2577 = vmatpush3.msk.msra.mxu1 %vm115_vm0, %v76_v31  ;;  %2602 = vmatprep.mubr.msk.f32.mxu0 %vm2938_vm4, %v2937_v25 }
  0xff   :  { %v325_v33 = vpop.permute.xlu1 %324  ;;  %2584 = vmatprep.subr.msk.mxu1 %vm115_vm0, %v3012_v0  ;;  %v78_v36 = vpop.permute.xlu0 %77 }
 0x100   :  { %2579 = vmatmul.mubr.msk.f32.vlgmr.msra.gmra.mrb[0].mxu1 %vm73_vm1, %v325_v33 }
 0x101   :  { %2581 = vmatprep.mubr.msk.f32.mxu1 %vm73_vm1, %v327_v28  ;;  %2585 = vmatpush3.msk.msra.mxu1 %vm115_vm0, %v3012_v0 }
 0x102   :  { %2603 = vmatmul.mubr.msk.f32.vlgmr.msra.gmra.mrb[4].mxu0 %vm73_vm1, %v689_v34 }
 0x103   :  { %v329_v35 = vpop.permute.xlu1 %328  ;;  %v522_v39 = vpop.permute.xlu0 %521 }
 0x104   :  { %2582 = vmatmul.mubr.msk.f32.gmra.mrb[2].mxu1 %vm73_vm1, %v329_v35 }
 0x105   :  { %2586 = vmatprep.mubr.msk.f32.mxu1 %vm73_vm1, %v3051_v12 }
 0x107   :  { %v81_v37 = vpop.permute.xlu1 %80  ;;  %v526_v43 = vpop.permute.xlu0 %525 }
 0x108   :  { %2587 = vmatmul.mubr.msk.f32.vlgmr.msra.gmra.mrb[0].mxu1 %vm73_vm1, %v3070_v16  ;;  %v89_v38 = vsel %vm71_vm2, %v78_v36, %v81_v37 }
 0x109   :  { %v90_v40 = vsel %vm73_vm1, %v89_v38, %v84_v32  ;;  %2589 = vmatprep.mubr.msk.f32.mxu1 %vm73_vm1, %v3060_v15 }
 0x10b   :  { %v87_v41 = vpop.permute.xlu1 %86 }
 0x10c   :  { %v91_v42 = vsel %vm75_vm3, %v90_v40, %v87_v41  ;;  %2590 = vmatmul.mubr.msk.f32.gmra.mrb[2].mxu1 %vm73_vm1, %v3078_v17 }
 0x10d   :  { %2592 = vmatprep.subr.msk.mxu1 %vm115_vm0, %v91_v42  ;;  %2594 = vmatprep.mubr.msk.f32.mxu1 %vm73_vm1, %v522_v39 }
 0x10e   :  { %2593 = vmatpush3.msk.msra.mxu1 %vm115_vm0, %v91_v42 }
 0x10f   :  { %v524_v44 = vpop.permute.xlu1 %523 }
 0x110   :  { %2595 = vmatmul.mubr.msk.f32.vlgmr.msra.gmra.mrb[0].mxu1 %vm73_vm1, %v524_v44 }
 0x111   :  { %2597 = vmatprep.mubr.msk.f32.mxu1 %vm73_vm1, %v526_v43 }
 0x113   :  { %v528_v45 = vpop.permute.xlu1 %527 }
 0x114   :  { %2598 = vmatmul.mubr.msk.f32.gmra.mrb[2].mxu1 %vm73_vm1, %v528_v45  ;;  %v3201_v45 = vld [vmem:[%s3561_s5] sm:$0xff] }
 0x118   :  { %v301_v49 = vpop.permute.xlu0 %300 }
 0x11c   :  { %v316_v55 = vpop.permute.xlu0 %315 }
 0x124   :  { %v306_v47 = vpop.permute.xlu1 %305 }
 0x128   :  { %v311_v56 = vpop.permute.xlu1 %310 }
 0x1cc   :  { %v2572_v48 = vpop.f32.mrb[0].mxu0 }
 0x1cd   :  { %v319_v50 = vadd.f32 %v2572_v48, %v306_v47  ;;  %v279_v51 = vpop.f32.mrb[1].mxu0 }
 0x1ce   :  { %v318_v52 = vadd.f32 %v301_v49, %v279_v51  ;;  %v3209_v49 = vld [vmem:[%s3561_s5 + $0x10] sm:$0xff] }
 0x1cf   :  { %635 = vrot.lane.b32.xlu0 %v319_v50, %s2940_s4 }
 0x1d0   :  { %v2575_v53 = vpop.f32.mrb[2].mxu0  ;;  %633 = vrot.lane.b32.xlu1 %v318_v52, %s2940_s4 }
 0x1d1   :  { %v289_v54 = vpop.f32.mrb[3].mxu0  ;;  %v321_v57 = vadd.f32 %v2575_v53, %v316_v55 }
 0x1d2   :  { %v320_v58 = vadd.f32 %v311_v56, %v289_v54  ;;  %v3225_v56 = vld [vmem:[%s3561_s5 + $0x8] sm:$0xff] }
 0x1d3   :  { %647 = vrot.lane.b32.xlu0 %v319_v50, %s2941_s23 }
 0x1d4   :  { %645 = vrot.lane.b32.xlu1 %v318_v52, %s2941_s23 }
 0x1d5   :  { %v765_v61 = vpop.f32.mrb[4].mxu0 }
 0x1d6   :  { %v2604_v62 = vpop.f32.mrb[5].mxu0 }
 0x1d7   :  { %659 = vrot.lane.b32.xlu0 %v319_v50, %s2942_s0  ;;  %v3247_v62 = vld [vmem:[%s3562_s6] sm:$0xff] }
 0x1d8   :  { %657 = vrot.lane.b32.xlu1 %v318_v52, %s2942_s0 }
 0x1db   :  { %639 = vrot.lane.b32.xlu0 %v321_v57, %s2940_s4 }
 0x1dc   :  { %637 = vrot.lane.b32.xlu1 %v320_v58, %s2940_s4 }
 0x1df   :  { %651 = vrot.lane.b32.xlu0 %v321_v57, %s2941_s23 }
 0x1e0   :  { %649 = vrot.lane.b32.xlu1 %v320_v58, %s2941_s23 }
 0x1e3   :  { %663 = vrot.lane.b32.xlu0 %v321_v57, %s2942_s0  ;;  %v2596_v59 = vpop.f32.mrb[0].mxu1 }
 0x1e4   :  { %661 = vrot.lane.b32.xlu1 %v320_v58, %s2942_s0  ;;  %v606_v60 = vpop.f32.mrb[1].mxu1 }
 0x1e7   :  { %v2599_v63 = vpop.f32.mrb[2].mxu1 }
 0x1e8   :  { %692 = vperm.xlu1 %2865, %v689_v34   ;;  %v616_v0 = vpop.f32.mrb[3].mxu1 }
 0x241   :  { %v636_v1 = vpop.permute.xlu0 %635 }
 0x242   :  { %v634_v2 = vpop.permute.xlu1 %633  ;;  %v670_v5 = vsel %vm71_vm2, %v319_v50, %v636_v1  ;;  %v2944_v1 = vmov 48  }
 0x243   :  { %v669_v6 = vsel %vm71_vm2, %v318_v52, %v634_v2  ;;  %2876 = vset.pattern.permute.xlu0 %v2944_v1  ;;  %2877 = vset.pattern.permute.xlu1 %v2944_v1 }
 0x245   :  { %v648_v3 = vpop.permute.xlu0 %647 }
 0x246   :  { %v646_v4 = vpop.permute.xlu1 %645  ;;  %v674_v7 = vsel %vm73_vm1, %v670_v5, %v648_v3 }
 0x247   :  { %v673_v9 = vsel %vm73_vm1, %v669_v6, %v646_v4 }
 0x249   :  { %v660_v8 = vpop.permute.xlu0 %659 }
 0x24a   :  { %v678_v10 = vsel %vm75_vm3, %v674_v7, %v660_v8  ;;  %v658_v11 = vpop.permute.xlu1 %657 }
 0x24b   :  { %v682_v12 = vadd.f32 %v2596_v59, %v678_v10  ;;  %v677_v13 = vsel %vm75_vm3, %v673_v9, %v658_v11 }
 0x24c   :  { %v681_v14 = vadd.f32 %v677_v13, %v606_v60 }
 0x24d   :  { %2902 = vtanh.f32 %v682_v12  ;;  %v640_v15 = vpop.permute.xlu0 %639 }
 0x24e   :  { %2904 = vtanh.f32 %v681_v14  ;;  %v638_v16 = vpop.permute.xlu1 %637  ;;  %v672_v19 = vsel %vm71_vm2, %v321_v57, %v640_v15  ;;  %v3232_v57 = vld [vmem:[%s3561_s5 + $0x18] sm:$0xff] }
 0x24f   :  { %v671_v20 = vsel %vm71_vm2, %v320_v58, %v638_v16 }
 0x251   :  { %v652_v17 = vpop.permute.xlu0 %651 }
 0x252   :  { %v650_v18 = vpop.permute.xlu1 %649  ;;  %v676_v21 = vsel %vm73_vm1, %v672_v19, %v652_v17 }
 0x253   :  { %v675_v23 = vsel %vm73_vm1, %v671_v20, %v650_v18 }
 0x255   :  { %v664_v22 = vpop.permute.xlu0 %663 }
 0x256   :  { %v680_v24 = vsel %vm75_vm3, %v676_v21, %v664_v22  ;;  %v662_v26 = vpop.permute.xlu1 %661 }
 0x257   :  { %v3172_v27 = vpop.eup %2902  ;;  %v684_v28 = vadd.f32 %v2599_v63, %v680_v24  ;;  %v679_v29 = vsel %vm75_vm3, %v675_v23, %v662_v26  ;;  %v3256_v63 = vld [vmem:[%s3562_s6 + $0x18] sm:$0xff] }
 0x258   :  { %v3175_v30 = vpop.eup %2904  ;;  %v683_v31 = vadd.f32 %v679_v29, %v616_v0  ;;  %784 = vrot.lane.b32.xlu1 %v3172_v27, %s2930_s19  ;;  %v3261_v0 = vld [vmem:[%s3562_s6 + $0x10] sm:$0xff] }
 0x259   :  { %2906 = vtanh.f32 %v684_v28  ;;  %782 = vrot.lane.b32.xlu0 %v3175_v30, %s2930_s19  ;;  %v2764_v20 = vpack.c.bf16 %v3172_v27, %v3175_v30  ;;  %v1441_v28 = vld [vmem:[%s3563_s7] sm:$0xff] }
 0x25a   :  { %2908 = vtanh.f32 %v683_v31 }
 0x263   :  { %v3181_v32 = vpop.eup %2906 }
 0x264   :  { %v3183_v33 = vpop.eup %2908  ;;  %788 = vrot.lane.b32.xlu1 %v3181_v32, %s2930_s19 }
 0x265   :  { %786 = vrot.lane.b32.xlu0 %v3183_v33, %s2930_s19  ;;  %v2768_v23 = vpack.c.bf16 %v3181_v32, %v3183_v33 }
 0x267   :  { %v693_v34 = vpop.permute.xlu1 %692 }
 0x268   :  { %v766_v35 = vadd.f32 %v765_v61, %v693_v34  ;;  %v3242_v61 = vld [vmem:[%s3562_s6 + $0x8] sm:$0xff] }
 0x26a   :  { %2910 = vtanh.f32 %v766_v35 }
 0x274   :  { %v3189_v36 = vpop.eup %2910 }
 0x275   :  { %804 = vrot.lane.b32.xlu0 %v3189_v36, %s2930_s19  ;;  %v3217_v55 = vmul.f32 0.5, %v3189_v36 }
 0x2ca   :  { %v785_v37 = vpop.permute.xlu1 %784 }
 0x2cb   :  { %v795_v38 = vadd.f32 %v3172_v27, %v785_v37  ;;  %v783_v39 = vpop.permute.xlu0 %782 }
 0x2cc   :  { %v794_v40 = vadd.f32 %v3175_v30, %v783_v39 }
 0x2cd   :  { %v799_v41 = vmul.f32 0.5, %v795_v38 }
 0x2ce   :  { %v798_v42 = vmul.f32 0.5, %v794_v40 }
 0x2d0   :  { %v2866_v43 = vpack.i.bf16 %v799_v41, %v798_v42  ;;  %v3195_v44 = vpack.c.bf16 %v799_v41, %v798_v42 }
 0x2d2   :  { %2867 = vrot.lane.b32.xlu1 %v2866_v43, %s2931_s24 }
 0x2d6   :  { %v789_v46 = vpop.permute.xlu1 %788  ;;  %842 = vrot.lane.b32.xlu1 %v3201_v45, %s2943_s26 }
 0x2d7   :  { %v797_v47 = vadd.f32 %v3181_v32, %v789_v46  ;;  %v787_v48 = vpop.permute.xlu0 %786 }
 0x2d8   :  { %v796_v50 = vadd.f32 %v3183_v33, %v787_v48 }
 0x2d9   :  { %v801_v51 = vmul.f32 0.5, %v797_v47 }
 0x2da   :  { %v800_v52 = vmul.f32 0.5, %v796_v50  ;;  %846 = vrot.lane.b32.xlu1 %v3209_v49, %s2943_s26 }
 0x2dc   :  { %v2871_v53 = vpack.i.bf16 %v801_v51, %v800_v52  ;;  %v3214_v54 = vpack.c.bf16 %v801_v51, %v800_v52 }
 0x2de   :  { %810 = vrot.lane.b32.xlu1 %v3217_v55, %s2931_s24  ;;  %2872 = vrot.lane.b32.xlu0 %v2871_v53, %s2931_s24 }
 0x2e2   :  { %844 = vrot.lane.b32.xlu0 %v3225_v56, %s2943_s26 }
 0x2e6   :  { %848 = vrot.lane.b32.xlu0 %v3232_v57, %s2943_s26 }
 0x2e7   :  { %v805_v58 = vpop.permute.xlu0 %804 }
 0x2e8   :  { %v807_v59 = vadd.f32 %v3189_v36, %v805_v58 }
 0x2ea   :  { %v808_v60 = vmul.f32 0.5, %v807_v59 }
 0x2ec   :  { %817 = vrot.lane.b32.xlu1 %v808_v60, %s2934_s2  ;;  %814 = vrot.lane.b32.xlu0 %v808_v60, %s2932_s27 }
 0x2f0   :  { %1079 = vrot.lane.b32.xlu1 %v3242_v61, %s2943_s26  ;;  %1077 = vrot.lane.b32.xlu0 %v3247_v62, %s2943_s26 }
 0x2f4   :  { %1083 = vrot.lane.b32.xlu1 %v3256_v63, %s2943_s26  ;;  %1081 = vrot.lane.b32.xlu0 %v3261_v0, %s2943_s26 }
 0x2f8   :  { %826 = vrot.lane.b32.xlu1 %v808_v60, %s2935_s20  ;;  %823 = vrot.lane.b32.xlu0 %v808_v60, %s2930_s19 }
 0x2fc   :  { %832 = vrot.lane.b32.xlu1 %v3217_v55, %s2936_s21  ;;  %829 = vrot.lane.b32.xlu0 %v3217_v55, %s2934_s2 }
 0x300   :  { %1272 = vrot.lane.b32.xlu0 %v3247_v62, %s2945_s28  ;;  %1274 = vrot.lane.b32.xlu1 %v3242_v61, %s2945_s28 }
 0x304   :  { %1276 = vrot.lane.b32.xlu0 %v3261_v0, %s2945_s28  ;;  %1278 = vrot.lane.b32.xlu1 %v3256_v63, %s2945_s28 }
 0x308   :  { %1060 = vperm.xlu1 %2877, %v3242_v61   ;;  %1055 = vperm.xlu0 %2876, %v3247_v62  }
 0x30c   :  { %1065 = vperm.xlu1 %2877, %v3261_v0   ;;  %1070 = vperm.xlu0 %2876, %v3256_v63  }
 0x344   :  { %v2868_v2 = vpop.permute.xlu1 %2867 }
 0x345   :  { %v2870_v3 = vunpack.i.h.bf16 %v2868_v2  ;;  %v2869_v4 = vunpack.i.l.bf16 %v2868_v2 }
 0x347   :  { %v2748_v5 = vpack.c.bf16 %v2870_v3, %v2869_v4 }
 0x348   :  { %v843_v6 = vpop.permute.xlu1 %842 }
 0x349   :  { %2749 = vmatprep.subr.bf16.mxu0 %v2748_v5  ;;  %2613 = vmatprep.mubr.msk.f32.mxu0 %vm866_vm5, %v843_v6 }
 0x34a   :  { %2751 = vmatpush3.bf16.msra.mxu0 %v2748_v5 }
 0x34c   :  { %v847_v11 = vpop.permute.xlu1 %846 }
 0x350   :  { %v2873_v7 = vpop.permute.xlu0 %2872  ;;  %v811_v14 = vpop.permute.xlu1 %810 }
 0x351   :  { %v2875_v8 = vunpack.i.h.bf16 %v2873_v7  ;;  %v2874_v9 = vunpack.i.l.bf16 %v2873_v7  ;;  %v820_v15 = vsel %vm71_vm2, %v3217_v55, %v811_v14 }
 0x353   :  { %v2752_v10 = vpack.c.bf16 %v2875_v8, %v2874_v9 }
 0x354   :  { %v845_v12 = vpop.permute.xlu0 %844 }
 0x355   :  { %2753 = vmatprep.subr.bf16.mxu0 %v2752_v10 }
 0x356   :  { %2755 = vmatpush3.bf16.msra.mxu0 %v2752_v10 }
 0x357   :  { %2757 = vmatprep.subr.bf16.mxu0 %v3195_v44 }
 0x358   :  { %v849_v13 = vpop.permute.xlu0 %848 }
 0x359   :  { %2614 = vmatmul.mubr.msk.f32.vlgmr.msra.gmra.mrb[6].mxu0 %vm866_vm5, %v845_v12 }
 0x35a   :  { %2759 = vmatpush3.bf16.msra.mxu0 %v3195_v44  ;;  %2616 = vmatprep.mubr.msk.f32.mxu0 %vm866_vm5, %v847_v11  ;;  %v2946_v44 = vmov 8  }
 0x35b   :  { %2761 = vmatprep.subr.bf16.mxu0 %v3214_v54  ;;  %2878 = vset.pattern.permute.xlu1 %v2946_v44 }
 0x35d   :  { %2617 = vmatmul.mubr.msk.f32.gmra.mrb[8].mxu0 %vm866_vm5, %v849_v13 }
 0x35e   :  { %v818_v16 = vpop.permute.xlu1 %817  ;;  %v815_v17 = vpop.permute.xlu0 %814  ;;  %2763 = vmatpush3.bf16.msra.mxu0 %v3214_v54  ;;  %2627 = vmatprep.mubr.msk.f32.mxu0 %vm866_vm5, %v3201_v45 }
 0x35f   :  { %v821_v18 = vsel %vm73_vm1, %v820_v15, %v815_v17  ;;  %2663 = vmatprep.subr.mxu0 %v2937_v25 }
 0x360   :  { %v822_v19 = vsel %vm75_vm3, %v821_v18, %v818_v16 }
 0x361   :  { %2628 = vmatmul.mubr.msk.f32.vlgmr.msra.gmra.mrb[6].mxu0 %vm866_vm5, %v3225_v56  ;;  %2633 = vmatprep.subr.mxu1 %v822_v19 }
 0x362   :  { %v1080_v21 = vpop.permute.xlu1 %1079  ;;  %2634 = vmatpush3.msra.mxu1 %v822_v19  ;;  %v1078_v22 = vpop.permute.xlu0 %1077  ;;  %2664 = vmatpush3.msra.mxu0 %v3189_v36 }
 0x363   :  { %2635 = vmatprep.mubr.msk.f32.mxu1 %vm1085_vm6, %v1078_v22  ;;  %2765 = vmatprep.subr.bf16.mxu1 %v2764_v20 }
 0x364   :  { %2630 = vmatprep.mubr.msk.f32.mxu0 %vm866_vm5, %v3209_v49  ;;  %2636 = vmatmul.mubr.msk.f32.vlgmr.msra.gmra.mrb[4].mxu1 %vm1085_vm6, %v1080_v21 }
 0x365   :  { %2767 = vmatpush3.bf16.msra.mxu1 %v2764_v20  ;;  %2631 = vmatmul.mubr.msk.f32.gmra.mrb[8].mxu0 %vm866_vm5, %v3232_v57 }
 0x366   :  { %2769 = vmatprep.subr.bf16.mxu1 %v2768_v23  ;;  %v1084_v24 = vpop.permute.xlu1 %1083  ;;  %v1082_v26 = vpop.permute.xlu0 %1081  ;;  %2665 = vmatprep.mubr.msk.f32.mxu0 %vm2938_vm4, %v2937_v25 }
 0x367   :  { %2638 = vmatprep.mubr.msk.f32.mxu1 %vm1085_vm6, %v1082_v26 }
 0x368   :  { %2639 = vmatmul.mubr.msk.f32.gmra.mrb[6].mxu1 %vm1085_vm6, %v1084_v24 }
 0x369   :  { %2771 = vmatpush3.bf16.msra.mxu1 %v2768_v23  ;;  %2649 = vmatprep.mubr.msk.f32.mxu1 %vm866_vm5, %v3247_v62 }
 0x36a   :  { %v827_v29 = vpop.permute.xlu1 %826  ;;  %v824_v31 = vpop.permute.xlu0 %823  ;;  %2666 = vmatmul.mubr.msk.f32.vlgmr.msra.gmra.mrb[10].mxu0 %vm1085_vm6, %v1441_v28 }
 0x36b   :  { %v835_v34 = vsel %vm71_vm2, %v824_v31, %v827_v29 }
 0x36c   :  { %2650 = vmatmul.mubr.msk.f32.vlgmr.msra.gmra.mrb[4].mxu1 %vm866_vm5, %v3242_v61 }
 0x36d   :  { %2652 = vmatprep.mubr.msk.f32.mxu1 %vm866_vm5, %v3261_v0 }
 0x36e   :  { %v833_v35 = vpop.permute.xlu1 %832  ;;  %v830_v37 = vpop.permute.xlu0 %829 }
 0x36f   :  { %v836_v38 = vsel %vm73_vm1, %v835_v34, %v830_v37 }
 0x370   :  { %v837_v39 = vsel %vm75_vm3, %v836_v38, %v833_v35  ;;  %2653 = vmatmul.mubr.msk.f32.gmra.mrb[6].mxu1 %vm866_vm5, %v3256_v63 }
 0x371   :  { %2655 = vmatprep.subr.mxu1 %v837_v39 }
 0x372   :  { %2656 = vmatpush3.msra.mxu1 %v837_v39  ;;  %v1273_v40 = vpop.permute.xlu0 %1272  ;;  %v1275_v41 = vpop.permute.xlu1 %1274 }
 0x373   :  { %2657 = vmatprep.mubr.msk.f32.mxu1 %vm1085_vm6, %v1273_v40 }
 0x374   :  { %2658 = vmatmul.mubr.msk.f32.vlgmr.msra.gmra.mrb[4].mxu1 %vm1085_vm6, %v1275_v41 }
 0x376   :  { %v1277_v42 = vpop.permute.xlu0 %1276  ;;  %v1279_v43 = vpop.permute.xlu1 %1278 }
 0x377   :  { %2660 = vmatprep.mubr.msk.f32.mxu1 %vm1085_vm6, %v1277_v42 }
 0x378   :  { %2661 = vmatmul.mubr.msk.f32.gmra.mrb[6].mxu1 %vm1085_vm6, %v1279_v43 }
 0x387   :  { %v1061_v45 = vpop.permute.xlu1 %1060  ;;  %v1056_v47 = vpop.permute.xlu0 %1055 }
 0x38b   :  { %v1071_v53 = vpop.permute.xlu0 %1070  ;;  %v1066_v54 = vpop.permute.xlu1 %1065 }
 0x434   :  { %v2629_v46 = vpop.f32.mrb[6].mxu0 }
 0x435   :  { %v1074_v48 = vadd.f32 %v2629_v46, %v1061_v45  ;;  %v1034_v49 = vpop.f32.mrb[7].mxu0 }
 0x436   :  { %v1073_v50 = vadd.f32 %v1056_v47, %v1034_v49  ;;  %v3393_v49 = vld [vmem:[%s3561_s5 + $0x20] sm:$0xff] }
 0x437   :  { %1383 = vrot.lane.b32.xlu0 %v1074_v48, %s2940_s4 }
 0x438   :  { %1381 = vrot.lane.b32.xlu1 %v1073_v50, %s2940_s4  ;;  %v2632_v51 = vpop.f32.mrb[8].mxu0 }
 0x439   :  { %v1044_v52 = vpop.f32.mrb[9].mxu0  ;;  %v1076_v55 = vadd.f32 %v2632_v51, %v1071_v53 }
 0x43a   :  { %v1075_v56 = vadd.f32 %v1066_v54, %v1044_v52  ;;  %v3401_v52 = vld [vmem:[%s3561_s5 + $0x30] sm:$0xff] }
 0x43b   :  { %1395 = vrot.lane.b32.xlu0 %v1074_v48, %s2941_s23 }
 0x43c   :  { %1393 = vrot.lane.b32.xlu1 %v1073_v50, %s2941_s23 }
 0x43d   :  { %v1515_v61 = vpop.f32.mrb[10].mxu0 }
 0x43e   :  { %v2667_v62 = vpop.f32.mrb[11].mxu0 }
 0x43f   :  { %1407 = vrot.lane.b32.xlu0 %v1074_v48, %s2942_s0 }
 0x440   :  { %1405 = vrot.lane.b32.xlu1 %v1073_v50, %s2942_s0 }
 0x443   :  { %1387 = vrot.lane.b32.xlu0 %v1076_v55, %s2940_s4 }
 0x444   :  { %1385 = vrot.lane.b32.xlu1 %v1075_v56, %s2940_s4 }
 0x447   :  { %1399 = vrot.lane.b32.xlu0 %v1076_v55, %s2941_s23  ;;  %v2659_v57 = vpop.f32.mrb[4].mxu1 }
 0x448   :  { %1397 = vrot.lane.b32.xlu1 %v1075_v56, %s2941_s23  ;;  %v1354_v58 = vpop.f32.mrb[5].mxu1 }
 0x44b   :  { %1411 = vrot.lane.b32.xlu0 %v1076_v55, %s2942_s0  ;;  %v2662_v59 = vpop.f32.mrb[6].mxu1 }
 0x44c   :  { %1409 = vrot.lane.b32.xlu1 %v1075_v56, %s2942_s0  ;;  %v1364_v60 = vpop.f32.mrb[7].mxu1 }
 0x450   :  { %1444 = vperm.xlu1 %2878, %v1441_v28  }
 0x454   :  { %2889 = vset.pattern.permute.xlu1 %v2944_v1 }
 0x4a9   :  { %v1384_v63 = vpop.permute.xlu0 %1383 }
 0x4aa   :  { %v1382_v0 = vpop.permute.xlu1 %1381  ;;  %v1418_v4 = vsel %vm71_vm2, %v1074_v48, %v1384_v63 }
 0x4ab   :  { %v1417_v5 = vsel %vm71_vm2, %v1073_v50, %v1382_v0  ;;  %v3424_v0 = vld [vmem:[%s3562_s6 + $0x28] sm:$0xff] }
 0x4ad   :  { %v1396_v2 = vpop.permute.xlu0 %1395 }
 0x4ae   :  { %v1394_v3 = vpop.permute.xlu1 %1393  ;;  %v1422_v6 = vsel %vm73_vm1, %v1418_v4, %v1396_v2  ;;  %v3429_v2 = vld [vmem:[%s3562_s6 + $0x20] sm:$0xff]  ;;  %v3443_v4 = vld [vmem:[%s3562_s6 + $0x30] sm:$0xff] }
 0x4af   :  { %v1421_v8 = vsel %vm73_vm1, %v1417_v5, %v1394_v3  ;;  %v3438_v3 = vld [vmem:[%s3562_s6 + $0x38] sm:$0xff] }
 0x4b1   :  { %v1408_v7 = vpop.permute.xlu0 %1407 }
 0x4b2   :  { %v1426_v9 = vsel %vm75_vm3, %v1422_v6, %v1408_v7  ;;  %v1406_v10 = vpop.permute.xlu1 %1405 }
 0x4b3   :  { %v1430_v11 = vadd.f32 %v2659_v57, %v1426_v9  ;;  %v1425_v12 = vsel %vm75_vm3, %v1421_v8, %v1406_v10 }
 0x4b4   :  { %v1429_v1 = vadd.f32 %v1425_v12, %v1354_v58 }
 0x4b5   :  { %2912 = vtanh.f32 %v1430_v11  ;;  %v1388_v13 = vpop.permute.xlu0 %1387 }
 0x4b6   :  { %2914 = vtanh.f32 %v1429_v1  ;;  %v1386_v14 = vpop.permute.xlu1 %1385  ;;  %v1420_v17 = vsel %vm71_vm2, %v1076_v55, %v1388_v13 }
 0x4b7   :  { %v1419_v18 = vsel %vm71_vm2, %v1075_v56, %v1386_v14 }
 0x4b9   :  { %v1400_v15 = vpop.permute.xlu0 %1399 }
 0x4ba   :  { %v1398_v16 = vpop.permute.xlu1 %1397  ;;  %v1424_v19 = vsel %vm73_vm1, %v1420_v17, %v1400_v15 }
 0x4bb   :  { %v1423_v21 = vsel %vm73_vm1, %v1419_v18, %v1398_v16 }
 0x4bd   :  { %v1412_v20 = vpop.permute.xlu0 %1411 }
 0x4be   :  { %v1428_v22 = vsel %vm75_vm3, %v1424_v19, %v1412_v20  ;;  %v1410_v23 = vpop.permute.xlu1 %1409 }
 0x4bf   :  { %v2913_v24 = vpop.eup %2912  ;;  %v1432_v26 = vadd.f32 %v2662_v59, %v1428_v22  ;;  %v1427_v28 = vsel %vm75_vm3, %v1423_v21, %v1410_v23  ;;  %v2424_v59 = vld [vmem:[%s3561_s5 + $0x28] sm:$0xff] }
 0x4c0   :  { %v2915_v29 = vpop.eup %2914  ;;  %v1431_v31 = vadd.f32 %v1427_v28, %v1364_v60  ;;  %v3364_v34 = vadd.f32 %v2913_v24, %v3172_v27  ;;  %v3415_v60 = vld [vmem:[%s3561_s5 + $0x38] sm:$0xff] }
 0x4c1   :  { %2916 = vtanh.f32 %v1432_v26  ;;  %v3367_v35 = vadd.f32 %v2915_v29, %v3175_v30 }
 0x4c2   :  { %2918 = vtanh.f32 %v1431_v31  ;;  %1537 = vrot.lane.b32.xlu1 %v3364_v34, %s2930_s19 }
 0x4c3   :  { %1535 = vrot.lane.b32.xlu0 %v3367_v35, %s2930_s19  ;;  %v2788_v22 = vpack.c.bf16 %v3364_v34, %v3367_v35 }
 0x4cb   :  { %v2917_v37 = vpop.eup %2916 }
 0x4cc   :  { %v2919_v38 = vpop.eup %2918  ;;  %v3374_v39 = vadd.f32 %v2917_v37, %v3181_v32 }
 0x4cd   :  { %v3377_v40 = vadd.f32 %v2919_v38, %v3183_v33 }
 0x4ce   :  { %1541 = vrot.lane.b32.xlu1 %v3374_v39, %s2930_s19 }
 0x4cf   :  { %1539 = vrot.lane.b32.xlu0 %v3377_v40, %s2930_s19  ;;  %v1445_v27 = vpop.permute.xlu1 %1444  ;;  %v2792_v26 = vpack.c.bf16 %v3374_v39, %v3377_v40 }
 0x4d0   :  { %v1516_v30 = vadd.f32 %v1515_v61, %v1445_v27 }
 0x4d2   :  { %2920 = vtanh.f32 %v1516_v30 }
 0x4dc   :  { %v2921_v41 = vpop.eup %2920 }
 0x4dd   :  { %v1520_v42 = vadd.f32 %v2921_v41, %v3189_v36 }
 0x4df   :  { %1557 = vrot.lane.b32.xlu0 %v1520_v42, %s2930_s19  ;;  %v1555_v58 = vmul.f32 0.5, %v1520_v42 }
 0x534   :  { %v1538_v43 = vpop.permute.xlu1 %1537 }
 0x535   :  { %v1548_v32 = vadd.f32 %v1538_v43, %v3364_v34  ;;  %v1536_v44 = vpop.permute.xlu0 %1535 }
 0x536   :  { %v1547_v33 = vadd.f32 %v1536_v44, %v3367_v35 }
 0x537   :  { %v1552_v45 = vmul.f32 0.5, %v1548_v32 }
 0x538   :  { %v1551_v46 = vmul.f32 0.5, %v1547_v33 }
 0x53a   :  { %v2879_v47 = vpack.i.bf16 %v1552_v45, %v1551_v46  ;;  %v3387_v48 = vpack.c.bf16 %v1552_v45, %v1551_v46 }
 0x53c   :  { %2880 = vrot.lane.b32.xlu1 %v2879_v47, %s2931_s24 }
 0x540   :  { %1595 = vrot.lane.b32.xlu1 %v3393_v49, %s2943_s26  ;;  %v1542_v36 = vpop.permute.xlu1 %1541 }
 0x541   :  { %v1550_v50 = vadd.f32 %v1542_v36, %v3374_v39  ;;  %v1540_v51 = vpop.permute.xlu0 %1539 }
 0x542   :  { %v1549_v53 = vadd.f32 %v1540_v51, %v3377_v40 }
 0x543   :  { %v1554_v54 = vmul.f32 0.5, %v1550_v50 }
 0x544   :  { %v1553_v55 = vmul.f32 0.5, %v1549_v53  ;;  %1599 = vrot.lane.b32.xlu1 %v3401_v52, %s2943_s26 }
 0x546   :  { %v2884_v56 = vpack.i.bf16 %v1554_v54, %v1553_v55  ;;  %v2784_v57 = vpack.c.bf16 %v1554_v54, %v1553_v55 }
 0x548   :  { %1563 = vrot.lane.b32.xlu1 %v1555_v58, %s2931_s24  ;;  %2885 = vrot.lane.b32.xlu0 %v2884_v56, %s2931_s24  ;;  %v2947_v56 = vmov 0.0|0.0  }
 0x54c   :  { %1597 = vrot.lane.b32.xlu0 %v2424_v59, %s2943_s26 }
 0x550   :  { %1601 = vrot.lane.b32.xlu0 %v3415_v60, %s2943_s26 }
 0x551   :  { %v1558_v61 = vpop.permute.xlu0 %1557 }
 0x552   :  { %v1560_v62 = vadd.f32 %v1558_v61, %v1520_v42 }
 0x554   :  { %v1561_v63 = vmul.f32 0.5, %v1560_v62 }
 0x556   :  { %1570 = vrot.lane.b32.xlu1 %v1561_v63, %s2934_s2  ;;  %1567 = vrot.lane.b32.xlu0 %v1561_v63, %s2932_s27 }
 0x55a   :  { %1831 = vrot.lane.b32.xlu1 %v3424_v0, %s2943_s26  ;;  %1829 = vrot.lane.b32.xlu0 %v3429_v2, %s2943_s26 }
 0x55e   :  { %1835 = vrot.lane.b32.xlu1 %v3438_v3, %s2943_s26  ;;  %1833 = vrot.lane.b32.xlu0 %v3443_v4, %s2943_s26 }
 0x562   :  { %1579 = vrot.lane.b32.xlu1 %v1561_v63, %s2935_s20  ;;  %1576 = vrot.lane.b32.xlu0 %v1561_v63, %s2930_s19 }
 0x566   :  { %1585 = vrot.lane.b32.xlu1 %v1555_v58, %s2936_s21  ;;  %1582 = vrot.lane.b32.xlu0 %v1555_v58, %s2934_s2 }
 0x56a   :  { %2023 = vrot.lane.b32.xlu0 %v3429_v2, %s2945_s28  ;;  %2025 = vrot.lane.b32.xlu1 %v3424_v0, %s2945_s28 }
 0x56e   :  { %2027 = vrot.lane.b32.xlu0 %v3443_v4, %s2945_s28  ;;  %2029 = vrot.lane.b32.xlu1 %v3438_v3, %s2945_s28 }
 0x572   :  { %1807 = vperm.xlu0 %2876, %v3429_v2   ;;  %1812 = vperm.xlu1 %2889, %v3424_v0  }
 0x576   :  { %1817 = vperm.xlu0 %2876, %v3443_v4   ;;  %1822 = vperm.xlu1 %2889, %v3438_v3  }
 0x5ae   :  { %v2881_v5 = vpop.permute.xlu1 %2880 }
 0x5af   :  { %v2883_v6 = vunpack.i.h.bf16 %v2881_v5  ;;  %v2882_v7 = vunpack.i.l.bf16 %v2881_v5 }
 0x5b1   :  { %v2772_v8 = vpack.c.bf16 %v2883_v6, %v2882_v7 }
 0x5b2   :  { %v1596_v9 = vpop.permute.xlu1 %1595 }
 0x5b3   :  { %2773 = vmatprep.subr.bf16.mxu0 %v2772_v8  ;;  %2676 = vmatprep.mubr.msk.f32.mxu0 %vm866_vm5, %v1596_v9 }
 0x5b4   :  { %2775 = vmatpush3.bf16.msra.mxu0 %v2772_v8 }
 0x5b6   :  { %v1600_v13 = vpop.permute.xlu1 %1599 }
 0x5ba   :  { %v2886_v10 = vpop.permute.xlu0 %2885  ;;  %v1564_v16 = vpop.permute.xlu1 %1563 }
 0x5bb   :  { %v2888_v11 = vunpack.i.h.bf16 %v2886_v10  ;;  %v2887_v12 = vunpack.i.l.bf16 %v2886_v10  ;;  %v1573_v17 = vsel %vm71_vm2, %v1555_v58, %v1564_v16 }
 0x5bd   :  { %v2776_v1 = vpack.c.bf16 %v2888_v11, %v2887_v12 }
 0x5be   :  { %v1598_v14 = vpop.permute.xlu0 %1597 }
 0x5bf   :  { %2777 = vmatprep.subr.bf16.mxu0 %v2776_v1 }
 0x5c0   :  { %2779 = vmatpush3.bf16.msra.mxu0 %v2776_v1 }
 0x5c1   :  { %2781 = vmatprep.subr.bf16.mxu0 %v3387_v48 }
 0x5c2   :  { %v1602_v15 = vpop.permute.xlu0 %1601 }
 0x5c3   :  { %2677 = vmatmul.mubr.msk.f32.vlgmr.msra.gmra.mrb[12].mxu0 %vm866_vm5, %v1598_v14 }
 0x5c4   :  { %2783 = vmatpush3.bf16.msra.mxu0 %v3387_v48  ;;  %2679 = vmatprep.mubr.msk.f32.mxu0 %vm866_vm5, %v1600_v13 }
 0x5c5   :  { %2785 = vmatprep.subr.bf16.mxu0 %v2784_v57 }
 0x5c7   :  { %2680 = vmatmul.mubr.msk.f32.gmra.mrb[14].mxu0 %vm866_vm5, %v1602_v15 }
 0x5c8   :  { %v1568_v18 = vpop.permute.xlu0 %1567  ;;  %v1571_v19 = vpop.permute.xlu1 %1570  ;;  %2787 = vmatpush3.bf16.msra.mxu0 %v2784_v57  ;;  %2690 = vmatprep.mubr.msk.f32.mxu0 %vm866_vm5, %v3393_v49 }
 0x5c9   :  { %v1574_v20 = vsel %vm73_vm1, %v1573_v17, %v1568_v18  ;;  %2796 = vmatprep.subr.bf16.mxu0 %v2947_v56 }
 0x5ca   :  { %v1575_v21 = vsel %vm75_vm3, %v1574_v20, %v1571_v19 }
 0x5cb   :  { %2691 = vmatmul.mubr.msk.f32.vlgmr.msra.gmra.mrb[12].mxu0 %vm866_vm5, %v2424_v59  ;;  %2696 = vmatprep.subr.mxu1 %v1575_v21 }
 0x5cc   :  { %v1830_v23 = vpop.permute.xlu0 %1829  ;;  %2697 = vmatpush3.msra.mxu1 %v1575_v21  ;;  %v1832_v24 = vpop.permute.xlu1 %1831  ;;  %2693 = vmatprep.mubr.msk.f32.mxu0 %vm866_vm5, %v3401_v52 }
 0x5cd   :  { %2698 = vmatprep.mubr.msk.f32.mxu1 %vm1085_vm6, %v1830_v23  ;;  %2789 = vmatprep.subr.bf16.mxu1 %v2788_v22 }
 0x5ce   :  { %2699 = vmatmul.mubr.msk.f32.vlgmr.msra.gmra.mrb[8].mxu1 %vm1085_vm6, %v1832_v24 }
 0x5cf   :  { %2791 = vmatpush3.bf16.msra.mxu1 %v2788_v22  ;;  %2694 = vmatmul.mubr.msk.f32.gmra.mrb[14].mxu0 %vm866_vm5, %v3415_v60 }
 0x5d0   :  { %2793 = vmatprep.subr.bf16.mxu1 %v2792_v26  ;;  %v1834_v28 = vpop.permute.xlu0 %1833  ;;  %v1836_v29 = vpop.permute.xlu1 %1835  ;;  %2734 = vmatprep.mubr.msk.f32.mxu0 %vm2938_vm4, %v2937_v25 }
 0x5d1   :  { %2701 = vmatprep.mubr.msk.f32.mxu1 %vm1085_vm6, %v1834_v28 }
 0x5d2   :  { %2702 = vmatmul.mubr.msk.f32.gmra.mrb[10].mxu1 %vm1085_vm6, %v1836_v29 }
 0x5d3   :  { %2795 = vmatpush3.bf16.msra.mxu1 %v2792_v26  ;;  %2712 = vmatprep.mubr.msk.f32.mxu1 %vm866_vm5, %v3429_v2 }
 0x5d4   :  { %v1577_v31 = vpop.permute.xlu0 %1576  ;;  %v1580_v37 = vpop.permute.xlu1 %1579 }
 0x5d5   :  { %v1588_v38 = vsel %vm71_vm2, %v1577_v31, %v1580_v37 }
 0x5d6   :  { %2713 = vmatmul.mubr.msk.f32.vlgmr.msra.gmra.mrb[8].mxu1 %vm866_vm5, %v3424_v0 }
 0x5d7   :  { %2715 = vmatprep.mubr.msk.f32.mxu1 %vm866_vm5, %v3443_v4 }
 0x5d8   :  { %v1583_v27 = vpop.permute.xlu0 %1582  ;;  %v1586_v30 = vpop.permute.xlu1 %1585 }
 0x5d9   :  { %v1589_v41 = vsel %vm73_vm1, %v1588_v38, %v1583_v27 }
 0x5da   :  { %v1590_v42 = vsel %vm75_vm3, %v1589_v41, %v1586_v30  ;;  %2716 = vmatmul.mubr.msk.f32.gmra.mrb[10].mxu1 %vm866_vm5, %v3438_v3 }
 0x5db   :  { %2718 = vmatprep.subr.mxu1 %v1590_v42 }
 0x5dc   :  { %2719 = vmatpush3.msra.mxu1 %v1590_v42  ;;  %v2024_v43 = vpop.permute.xlu0 %2023  ;;  %v2026_v32 = vpop.permute.xlu1 %2025  ;;  %v2192_v42 = vld [vmem:[%s3564_s8] sm:$0xf] }
 0x5dd   :  { %2720 = vmatprep.mubr.msk.f32.mxu1 %vm1085_vm6, %v2024_v43 }
 0x5de   :  { %2721 = vmatmul.mubr.msk.f32.vlgmr.msra.gmra.mrb[8].mxu1 %vm1085_vm6, %v2026_v32 }
 0x5e0   :  { %v2028_v44 = vpop.permute.xlu0 %2027  ;;  %v2030_v33 = vpop.permute.xlu1 %2029 }
 0x5e1   :  { %2723 = vmatprep.mubr.msk.f32.mxu1 %vm1085_vm6, %v2028_v44 }
 0x5e2   :  { %2724 = vmatmul.mubr.msk.f32.gmra.mrb[10].mxu1 %vm1085_vm6, %v2030_v33 }
 0x5f1   :  { %v1813_v45 = vpop.permute.xlu1 %1812  ;;  %v1808_v47 = vpop.permute.xlu0 %1807 }
 0x5f5   :  { %v1823_v52 = vpop.permute.xlu1 %1822  ;;  %v1818_v53 = vpop.permute.xlu0 %1817 }
 0x69e   :  { %v2692_v46 = vpop.f32.mrb[12].mxu0 }
 0x69f   :  { %v1826_v48 = vadd.f32 %v2692_v46, %v1813_v45  ;;  %v1786_v49 = vpop.f32.mrb[13].mxu0 }
 0x6a0   :  { %v1825_v36 = vadd.f32 %v1808_v47, %v1786_v49 }
 0x6a1   :  { %2134 = vrot.lane.b32.xlu1 %v1826_v48, %s2940_s4 }
 0x6a2   :  { %2132 = vrot.lane.b32.xlu0 %v1825_v36, %s2940_s4  ;;  %v2695_v50 = vpop.f32.mrb[14].mxu0 }
 0x6a3   :  { %v1796_v51 = vpop.f32.mrb[15].mxu0  ;;  %v1828_v54 = vadd.f32 %v2695_v50, %v1823_v52 }
 0x6a4   :  { %v1827_v55 = vadd.f32 %v1818_v53, %v1796_v51 }
 0x6a5   :  { %2146 = vrot.lane.b32.xlu1 %v1826_v48, %s2941_s23 }
 0x6a6   :  { %2144 = vrot.lane.b32.xlu0 %v1825_v36, %s2941_s23 }
 0x6a9   :  { %2158 = vrot.lane.b32.xlu1 %v1826_v48, %s2942_s0 }
 0x6aa   :  { %2156 = vrot.lane.b32.xlu0 %v1825_v36, %s2942_s0 }
 0x6ad   :  { %2138 = vrot.lane.b32.xlu1 %v1828_v54, %s2940_s4 }
 0x6ae   :  { %2136 = vrot.lane.b32.xlu0 %v1827_v55, %s2940_s4 }
 0x6b1   :  { %2150 = vrot.lane.b32.xlu1 %v1828_v54, %s2941_s23  ;;  %v2722_v57 = vpop.f32.mrb[8].mxu1 }
 0x6b2   :  { %2148 = vrot.lane.b32.xlu0 %v1827_v55, %s2941_s23  ;;  %v2105_v58 = vpop.f32.mrb[9].mxu1 }
 0x6b5   :  { %2162 = vrot.lane.b32.xlu1 %v1828_v54, %s2942_s0  ;;  %v2725_v59 = vpop.f32.mrb[10].mxu1 }
 0x6b6   :  { %2160 = vrot.lane.b32.xlu0 %v1827_v55, %s2942_s0  ;;  %v2115_v60 = vpop.f32.mrb[11].mxu1 }
 0x713   :  { %v2135_v61 = vpop.permute.xlu1 %2134 }
 0x714   :  { %v2133_v62 = vpop.permute.xlu0 %2132  ;;  %v2169_v2 = vsel %vm71_vm2, %v1826_v48, %v2135_v61 }
 0x715   :  { %v2168_v3 = vsel %vm71_vm2, %v1825_v36, %v2133_v62 }
 0x717   :  { %v2147_v63 = vpop.permute.xlu1 %2146 }
 0x718   :  { %v2145_v0 = vpop.permute.xlu0 %2144  ;;  %v2173_v4 = vsel %vm73_vm1, %v2169_v2, %v2147_v63 }
 0x719   :  { %v2172_v6 = vsel %vm73_vm1, %v2168_v3, %v2145_v0 }
 0x71b   :  { %v2159_v5 = vpop.permute.xlu1 %2158 }
 0x71c   :  { %v2177_v7 = vsel %vm75_vm3, %v2173_v4, %v2159_v5  ;;  %v2157_v8 = vpop.permute.xlu0 %2156 }
 0x71d   :  { %v2181_v9 = vadd.f32 %v2722_v57, %v2177_v7  ;;  %v2176_v10 = vsel %vm75_vm3, %v2172_v6, %v2157_v8 }
 0x71e   :  { %v2180_v11 = vadd.f32 %v2176_v10, %v2105_v58 }
 0x71f   :  { %2922 = vtanh.f32 %v2181_v9  ;;  %v2139_v12 = vpop.permute.xlu1 %2138 }
 0x720   :  { %2924 = vtanh.f32 %v2180_v11  ;;  %v2137_v1 = vpop.permute.xlu0 %2136  ;;  %v2171_v15 = vsel %vm71_vm2, %v1828_v54, %v2139_v12 }
 0x721   :  { %v2170_v16 = vsel %vm71_vm2, %v1827_v55, %v2137_v1 }
 0x723   :  { %v2151_v13 = vpop.permute.xlu1 %2150 }
 0x724   :  { %v2149_v14 = vpop.permute.xlu0 %2148  ;;  %v2175_v17 = vsel %vm73_vm1, %v2171_v15, %v2151_v13 }
 0x725   :  { %v2174_v19 = vsel %vm73_vm1, %v2170_v16, %v2149_v14 }
 0x727   :  { %v2163_v18 = vpop.permute.xlu1 %2162 }
 0x728   :  { %v2179_v20 = vsel %vm75_vm3, %v2175_v17, %v2163_v18  ;;  %v2161_v21 = vpop.permute.xlu0 %2160 }
 0x729   :  { %v2923_v22 = vpop.eup %2922  ;;  %v2183_v23 = vadd.f32 %v2725_v59, %v2179_v20  ;;  %v2178_v24 = vsel %vm75_vm3, %v2174_v19, %v2161_v21 }
 0x72a   :  { %v2925_v26 = vpop.eup %2924  ;;  %v2182_v28 = vadd.f32 %v2178_v24, %v2115_v60  ;;  %v2189_v29 = vadd.f32 %v2923_v22, %v3364_v34  ;;  %v2948_v34 = vmov 32  }
 0x72b   :  { %2926 = vtanh.f32 %v2183_v23  ;;  %v2188_v31 = vadd.f32 %v2925_v26, %v3367_v35  ;;  %2900 = vset.pattern.permute.xlu0 %v2948_v34  ;;  %2901 = vset.pattern.permute.xlu1 %v2948_v34 }
 0x72c   :  { %2928 = vtanh.f32 %v2182_v28 }
 0x72d   :  { %v2797_v37 = vpack.c.bf16 %v2189_v29, %v2188_v31  ;;  %v2890_v38 = vpack.i.bf16 %v2189_v29, %v2188_v31 }
 0x72f   :  { %2798 = vmatpush3.bf16.msra.mxu0 %v2797_v37  ;;  %2891 = vrot.lane.b32.xlu0 %v2890_v38, %s2931_s24 }
 0x730   :  { %2799 = vmatprep.subr.bf16.mxu0 %v2947_v56 }
 0x733   :  { %2196 = vperm.xlu0 %2900, %v2192_v42  }
 0x735   :  { %v2927_v27 = vpop.eup %2926 }
 0x736   :  { %v2929_v30 = vpop.eup %2928  ;;  %v2191_v41 = vadd.f32 %v2927_v27, %v3374_v39  ;;  %v2193_v39 = vld [vmem:[%s3565_s9] sm:$0xf] }
 0x737   :  { %v2190_v35 = vadd.f32 %v2929_v30, %v3377_v40 }
 0x739   :  { %v2895_v43 = vpack.i.bf16 %v2191_v41, %v2190_v35  ;;  %v2800_v32 = vpack.c.bf16 %v2191_v41, %v2190_v35 }
 0x73b   :  { %2896 = vrot.lane.b32.xlu1 %v2895_v43, %s2931_s24  ;;  %2801 = vmatpush3.bf16.msra.mxu0 %v2800_v32 }
 0x73c   :  { %2802 = vmatprep.subr.bf16.mxu0 %v2947_v56 }
 0x73e   :  { %2735 = vmatmul.mubr.msk.f32.vlgmr.msra.gmra.mrb[16].mxu0 %vm866_vm5, %v2192_v42 }
 0x73f   :  { %2745 = vmatprep.mubr.msk.f32.mxu0 %vm2938_vm4, %v2937_v25  ;;  %2275 = vperm.xlu1 %2901, %v2193_v39  }
 0x7a1   :  { %v2892_v44 = vpop.permute.xlu0 %2891 }
 0x7a2   :  { %v2894_v40 = vunpack.i.h.bf16 %v2892_v44  ;;  %v2893_v33 = vunpack.i.l.bf16 %v2892_v44 }
 0x7a4   :  { %v2803_v45 = vpack.c.bf16 %v2894_v40, %v2893_v33 }
 0x7a6   :  { %2804 = vmatpush3.bf16.msra.mxu0 %v2803_v45 }
 0x7a7   :  { %2805 = vmatprep.subr.bf16.mxu0 %v2947_v56 }
 0x7ad   :  { %v2897_v46 = vpop.permute.xlu1 %2896 }
 0x7ae   :  { %v2899_v47 = vunpack.i.h.bf16 %v2897_v46  ;;  %v2898_v48 = vunpack.i.l.bf16 %v2897_v46 }
 0x7b0   :  { %v2806_v49 = vpack.c.bf16 %v2899_v47, %v2898_v48 }
 0x7b2   :  { %2807 = vmatpush3.bf16.msra.mxu0 %v2806_v49  ;;  %v2197_v36 = vpop.permute.xlu0 %2196 }
 0x7b5   :  { %2746 = vmatmul.mubr.msk.f32.vlgmr.msra.gmra.mrb[18].mxu0 %vm866_vm5, %v2193_v39 }
 0x7be   :  { %v2276_v52 = vpop.permute.xlu1 %2275 }
 0x811   :  { %v2267_v50 = vpop.f32.mrb[16].mxu0 }
 0x812   :  { %v2736_v51 = vpop.f32.mrb[17].mxu0  ;;  %v2268_v25 = vadd.f32 %v2267_v50, %v2197_v36 }
 0x814   :  { %2272 = vst.msk [vmem:[%s3566_s10] sm:$0xf] %vm2271_vm7, %v2268_v25 }
 0x888   :  { %v2362_v53 = vpop.f32.mrb[18].mxu0 }
 0x889   :  { %v2363_v54 = vadd.f32 %v2362_v53, %v2276_v52  ;;  %v2747_v55 = vpop.f32.mrb[19].mxu0 }
 0x88b   :  { %2366 = vst.msk [vmem:[%s3567_s11] sm:$0xf] %vm2271_vm7, %v2363_v54 }

</bundles_post_ra>
